<compile_context>
chip_gen: v6e
topology: v6e:2x2x1
jax: 0.10.0
libtpu: 0.0.40
codegen_flags: <defaults>
</compile_context>

<pallas_src>
import functools

import jax
import jax.numpy as jnp
from jax import lax
from jax.experimental import pallas as pl
from jax.experimental.pallas import tpu as pltpu


def _make_slab_plan():
    """Static plan shared by wrapper and kernel.

    The 3x3 conv on the 2x-nearest-upsampled, reflection-padded input is equivalent to,
    per output parity (di,dj), a 2x2 conv on the edge-padded original x.  Tap (tr,tc) of
    parity (di,dj) reads the input slab with (row, col) offset (di+tr, dj+tc) in the
    edge-padded image, so only 9 distinct slabs exist.  For each slab we record which
    parities use it (their weights are packed side-by-side along the MXU N dim).
    Returns ([(row_off, col_off, col_block_offset, [(parity_idx, tr, tc), ...])], n_blocks)
    """
    plan = []
    off = 0
    for ro in range(3):
        for co in range(3):
            uses = []
            for di in range(2):
                for dj in range(2):
                    tr, tc = ro - di, co - dj
                    if 0 <= tr <= 1 and 0 <= tc <= 1:
                        uses.append((2 * di + dj, tr, tc))
            plan.append((ro, co, off, uses))
            off += len(uses)
    return plan, off


_SLAB_PLAN, _N_WCOLS = _make_slab_plan()   # _N_WCOLS == 16


def _pick_tile_rows(h, w, max_m=1024):
    """Largest divisor d of h with d*w <= max_m and d*w % 8 == 0 (sublane-aligned block)."""
    best = None
    for d in range(1, h + 1):
        if h % d:
            continue
        m = d * w
        if m <= max_m and m % 8 == 0:
            best = d
    if best is None:
        best = h   # full-extent block is exempt from the (8,128) divisibility rule
    return best


def _upsample_block_kernel(xh_ref, w_ref, pgb_ref, o_ref, y_scr, stat_scr, norm_scr, *,
                           eps, cin, cout_p, thx, xw, hw, n_ln):
    phase = pl.program_id(1)   # 0: conv + stats accumulation, 1: normalize + write
    t = pl.program_id(2)       # row tile (in original-x rows)
    m = thx * xw

    @pl.when(phase == 0)
    def _conv_and_stats():
        @pl.when(t == 0)
        def _():
            stat_scr[...] = jnp.zeros_like(stat_scr)

        r0 = pl.multiple_of(t * thx, thx)

        # Four per-parity f32 accumulators (output parities (di,dj) of the 2x upsample).
        accs = [jnp.zeros((m, cout_p), jnp.float32) for _ in range(4)]
        # 9 shifted slabs of the edge-padded original x; each feeds one matmul whose RHS
        # packs the weights of every parity that uses this slab along N (no wasted MACs).
        for (ro, co, off, uses) in _SLAB_PLAN:
            lhs = xh_ref[0, pl.ds(r0 + ro, thx), co:co + xw, :].reshape(m, cin)
            rhs = w_ref[:, off * cout_p:(off + len(uses)) * cout_p]
            res = jnp.dot(lhs, rhs, preferred_element_type=jnp.float32)
            for k, (p, _, _) in enumerate(uses):
                accs[p] = accs[p] + res[:, k * cout_p:(k + 1) * cout_p]

        # Stash conv output (for phase 1) and accumulate per-channel sufficient stats.
        s = jnp.zeros((1, cout_p), jnp.float32)
        ss = jnp.zeros((1, cout_p), jnp.float32)
        for p in range(4):
            y_scr[t, p] = accs[p].astype(y_scr.dtype)
            s = s + jnp.sum(accs[p], axis=0, keepdims=True)
            ss = ss + jnp.sum(accs[p] * accs[p], axis=0, keepdims=True)
        stat_scr[0:1, :] = stat_scr[0:1, :] + s
        stat_scr[1:2, :] = stat_scr[1:2, :] + ss

    @pl.when(phase == 1)
    def _normalize():
        @pl.when(t == 0)
        def _():
            # Fold IN/LN mix + gamma/beta into one per-channel affine, once per sample.
            sm = stat_scr[0:1, :]
            sq = stat_scr[1:2, :]
            mean_in = sm * (1.0 / hw)
            var_in = jnp.maximum((sq - sm * mean_in) * (1.0 / (hw - 1.0)), 0.0)
            inv_in = lax.rsqrt(var_in + eps)

            # Padded channels of y are exactly 0 (zero weight columns), so full-lane sums
            # equal true-channel sums for the LN stats.
            tot_s = jnp.sum(sm, keepdims=True)
            tot_q = jnp.sum(sq, keepdims=True)
            mean_ln = tot_s * (1.0 / n_ln)
            var_ln = jnp.maximum((tot_q - tot_s * mean_ln) * (1.0 / (n_ln - 1.0)), 0.0)
            inv_ln = lax.rsqrt(var_ln + eps)

            rho = pgb_ref[0:1, :]
            gamma = pgb_ref[1:2, :]
            beta = pgb_ref[2:3, :]
            a_in = rho * inv_in
            a_ln = (1.0 - rho) * inv_ln
            norm_scr[0:1, :] = gamma * (a_in + a_ln)
            norm_scr[1:2, :] = beta - gamma * (a_in * mean_in + a_ln * mean_ln)

        scale = norm_scr[0:1, :]
        shift = norm_scr[1:2, :]
        for p in range(4):
            di, dj = p // 2, p % 2
            z = y_scr[t, p].astype(jnp.float32) * scale + shift
            z = jnp.where(z >= 0.0, z, 0.2 * z)          # LeakyReLU(0.2)
            o_ref[0, di, dj] = z


def upsample_block(x, conv_w, rho, gamma, beta, *, eps=1.1e-05, tile_rows=None,
                   compute_dtype=jnp.bfloat16, stash_dtype=jnp.float32, max_tile_m=1024):
    """x: [N, Cin, H, W] f32; conv_w: [Cout, Cin, 3, 3]; rho/gamma/beta: [Cout].
    Returns [N, Cout, 2H, 2W] f32 (NCHW, matching the PyTorch module)."""
    n, cin, h, w = x.shape
    cout = conv_w.shape[0]
    if tile_rows is None:
        tile_rows = _pick_tile_rows(h, w, max_tile_m)
    assert h % tile_rows == 0, (h, tile_rows)
    nt = h // tile_rows
    m = tile_rows * w
    cout_p = ((cout + 127) // 128) * 128          # lane-dense output stores

    # Activation: cast first (2-byte wrapper pass), NCHW -> NHWC, edge-pad by 1.  The
    # reflection pad of the upsampled image is exactly an edge (replicate) pad of x.
    xh = jnp.transpose(x.astype(compute_dtype), (0, 2, 3, 1))
    xh = jnp.pad(xh, ((0, 0), (1, 1), (1, 1), (0, 0)), mode="edge")

    # Subpixel weights: fold the 3 kh (resp. kw) taps into 2 taps per output parity.
    fold = jnp.array([[[1., 0., 0.], [0., 1., 1.]],
                      [[1., 1., 0.], [0., 0., 1.]]], dtype=jnp.float32)   # [parity, tap, k]
    # w2[di, dj, tr, tc, cin, cout]
    w2 = jnp.einsum('ark,bsl,oikl->abrsio', fold, fold, conv_w.astype(jnp.float32))
    blocks = []
    for (_, _, _, uses) in _SLAB_PLAN:
        for (p, tr, tc) in uses:
            di, dj = p // 2, p % 2
            blocks.append(jnp.pad(w2[di, dj, tr, tc], ((0, 0), (0, cout_p - cout))))
    w_packed = jnp.concatenate(blocks, axis=1).astype(compute_dtype)   # (cin, 16*cout_p)

    pgb = jnp.pad(jnp.stack([rho, gamma, beta]).astype(jnp.float32),
                  ((0, 0), (0, cout_p - cout)))

    hw_up = float(4 * h * w)                       # spatial count at upsampled resolution
    kernel = functools.partial(
        _upsample_block_kernel, eps=float(eps), cin=cin, cout_p=cout_p,
        thx=tile_rows, xw=w, hw=hw_up, n_ln=float(4 * h * w * cout))

    # Generation-aware VMEM budget.
    c_isz = jnp.dtype(compute_dtype).itemsize
    s_isz = jnp.dtype(stash_dtype).itemsize
    needed = (2 * (h + 2) * (w + 2) * cin * c_isz            # resident activation (x2 buf)
              + cin * _N_WCOLS * cout_p * c_isz              # packed weights
              + 2 * 4 * m * cout_p * 4                       # output block (x2 buf)
              + nt * 4 * m * cout_p * s_isz                  # per-sample conv-output stash
              + 10 * m * cout_p * 4                          # accumulators / matmul results
              + 4 * cout_p * 4 + (1 << 20))
    cap = 128 * 1024 * 1024
    try:
        cap = int(pltpu.get_tpu_info().vmem_capacity_bytes)
    except Exception:
        pass
    vmem_limit = int(min(max(needed * 5 // 4, 32 * 1024 * 1024), cap * 3 // 4))

    out = pl.pallas_call(
        kernel,
        out_shape=jax.ShapeDtypeStruct((n, 2, 2, h * w, cout_p), jnp.float32),
        grid_spec=pltpu.PrefetchScalarGridSpec(
            num_scalar_prefetch=0,
            # (batch, phase, row-tile).  Spatial stays "arbitrary": phase 0 accumulates
            # per-sample stats across tiles, phase 1 consumes them.
            grid=(n, 2, nt),
            in_specs=[
                # Whole edge-padded sample, resident across both phases (fetched once / b).
                pl.BlockSpec((1, h + 2, w + 2, cin), lambda b, p, t: (b, 0, 0, 0)),
                pl.BlockSpec((cin, _N_WCOLS * cout_p), lambda b, p, t: (0, 0)),   # resident
                pl.BlockSpec((3, cout_p), lambda b, p, t: (0, 0)),                # resident
            ],
            # Parity-outer output: every store is a dense (M, cout_p) slab, no interleave.
            out_specs=pl.BlockSpec((1, 2, 2, m, cout_p),
                                   lambda b, p, t: (b, 0, 0, t * p, 0)),
            scratch_shapes=[
                pltpu.VMEM((nt, 4, m, cout_p), stash_dtype),   # per-sample conv output
                pltpu.VMEM((2, cout_p), jnp.float32),          # per-channel sum / sumsq
                pltpu.VMEM((2, cout_p), jnp.float32),          # folded scale / shift
            ],
        ),
        compiler_params=pltpu.CompilerParams(
            dimension_semantics=("parallel", "arbitrary", "arbitrary"),
            vmem_limit_bytes=vmem_limit,
        ),
    )(xh, w_packed, pgb)

    # (n, di, dj, a, b, c) -> NCHW [n, c, 2a+di, 2b+dj]: one fused slice+transpose pass.
    out = out.reshape(n, 2, 2, h, w, cout_p)[..., :cout]
    out = jnp.transpose(out, (0, 5, 3, 1, 4, 2)).reshape(n, cout, 2 * h, 2 * w)
    return out


def _reference(x, conv_w, rho, gamma, beta, eps=1.1e-05):
    """Plain-JAX reference (exact module semantics) for the correctness check."""
    cout = conv_w.shape[0]
    xu = jnp.repeat(jnp.repeat(x, 2, axis=2), 2, axis=3)
    xp = jnp.pad(xu, ((0, 0), (0, 0), (1, 1), (1, 1)), mode="reflect")
    y = lax.conv_general_dilated(xp, conv_w, (1, 1), "VALID",
                                 dimension_numbers=("NCHW", "OIHW", "NCHW"))
    in_mean = jnp.mean(y, axis=(2, 3), keepdims=True)
    in_var = jnp.sum((y - in_mean) ** 2, axis=(2, 3), keepdims=True) / (
        y.shape[2] * y.shape[3] - 1)
    out_in = (y - in_mean) / jnp.sqrt(in_var + eps)
    ln_mean = jnp.mean(y, axis=(1, 2, 3), keepdims=True)
    ln_var = jnp.sum((y - ln_mean) ** 2, axis=(1, 2, 3), keepdims=True) / (
        y.shape[1] * y.shape[2] * y.shape[3] - 1)
    out_ln = (y - ln_mean) / jnp.sqrt(ln_var + eps)
    r = rho.reshape(1, cout, 1, 1)
    g = gamma.reshape(1, cout, 1, 1)
    b = beta.reshape(1, cout, 1, 1)
    out = r * out_in + (1 - r) * out_ln
    out = out * g + b
    return jnp.where(out >= 0, out, 0.2 * out)


if __name__ == "__main__":
    key = jax.random.PRNGKey(0)
    conv_dim = 8                    # Cin; Cout = conv_dim // 2
    n, h, w = 2, 8, 8
    cout = conv_dim // 2

    k_x, k_w, k_r, k_g, k_b = jax.random.split(key, 5)
    x = jax.random.normal(k_x, (n, conv_dim, h, w), dtype=jnp.float32)
    conv_w = 0.1 * jax.random.normal(k_w, (cout, conv_dim, 3, 3), dtype=jnp.float32)

    # 1) Module-default ILN params, f32 matmuls, forced multi-row-tile grid (exercises the
    #    two-phase stats across 4 tiles).  Strict tolerance.
    rho0 = jnp.zeros((cout,), jnp.float32)
    gamma0 = jnp.ones((cout,), jnp.float32)
    beta0 = jnp.zeros((cout,), jnp.float32)
    out = jax.block_until_ready(
        upsample_block(x, conv_w, rho0, gamma0, beta0,
                       tile_rows=2, compute_dtype=jnp.float32))
    ref = _reference(x, conv_w, rho0, gamma0, beta0)
    assert out.shape == (n, cout, 2 * h, 2 * w), out.shape
    err = float(jnp.max(jnp.abs(out - ref)))
    assert jnp.allclose(out, ref, atol=1e-4, rtol=1e-4), err

    # 2) Non-trivial ILN params, default bf16 matmul inputs (now all gens), bf16 stash,
    #    auto tile size (single tile).  Loose tolerance.
    rho1 = jax.random.uniform(k_r, (cout,), dtype=jnp.float32)
    gamma1 = 1.0 + 0.1 * jax.random.normal(k_g, (cout,), dtype=jnp.float32)
    beta1 = 0.1 * jax.random.normal(k_b, (cout,), dtype=jnp.float32)
    out_bf = jax.block_until_ready(
        upsample_block(x, conv_w, rho1, gamma1, beta1, stash_dtype=jnp.bfloat16))
    ref1 = _reference(x, conv_w, rho1, gamma1, beta1)
    assert out_bf.shape == (n, cout, 2 * h, 2 * w), out_bf.shape
    err_bf = float(jnp.max(jnp.abs(out_bf - ref1)))
    assert err_bf < 0.1, err_bf

    print("KERNEL_OK")
</pallas_src>

<mosaic_0001>
module attributes {stable_mosaic.version = 11 : i64} {
  func.func @_upsample_block_kernel(%arg0: i32, %arg1: i32, %arg2: i32, %arg3: memref<1x10x10x8xf32, #tpu.memory_space<vmem>>, %arg4: memref<8x2048xf32, #tpu.memory_space<vmem>>, %arg5: memref<3x128xf32, #tpu.memory_space<vmem>>, %arg6: memref<1x2x2x16x128xf32, #tpu.memory_space<vmem>>, %arg7: memref<4x4x16x128xf32, #tpu.memory_space<vmem>>, %arg8: memref<2x128xf32, #tpu.memory_space<vmem>>, %arg9: memref<2x128xf32, #tpu.memory_space<vmem>>) attributes {dimension_semantics = [#tpu.dimension_semantics<parallel>, #tpu.dimension_semantics<arbitrary>, #tpu.dimension_semantics<arbitrary>], iteration_bounds = array<i64: 2, 2, 4>, scalar_prefetch = 0 : i64, scratch_operands = 3 : i64, tpu.core_type = #tpu.core_type<tc>, window_params = [{transform_indices = @transform_0, window_bounds = array<i64: 1, 10, 10, 8>}, {pipeline_mode = #tpu.pipeline_mode<synchronous>, transform_indices = @transform_1, window_bounds = array<i64: 8, 2048>}, {pipeline_mode = #tpu.pipeline_mode<synchronous>, transform_indices = @transform_2, window_bounds = array<i64: 3, 128>}, {transform_indices = @transform_3, window_bounds = array<i64: 1, 2, 2, 16, 128>}]} {
    %c0_i32 = arith.constant 0 : i32
    %0 = arith.cmpi eq, %arg1, %c0_i32 : i32
    %1 = arith.extui %0 : i1 to i32
    %c0_i32_0 = arith.constant 0 : i32
    %2 = arith.cmpi ne, %1, %c0_i32_0 : i32
    scf.if %2 {
      %c0_i32_2 = arith.constant 0 : i32
      %6 = arith.cmpi eq, %arg2, %c0_i32_2 : i32
      %7 = arith.extui %6 : i1 to i32
      %c0_i32_3 = arith.constant 0 : i32
      %8 = arith.cmpi ne, %7, %c0_i32_3 : i32
      scf.if %8 {
        %cst_88 = arith.constant 0.000000e+00 : f32
        %158 = vector.broadcast %cst_88 : f32 to vector<2x128xf32>
        %c0_89 = arith.constant 0 : index
        %c0_90 = arith.constant 0 : index
        %159 = vector.load %arg8[%c0_89, %c0_90] : memref<2x128xf32, #tpu.memory_space<vmem>>, vector<2x128xf32>
        tpu.vector_store %arg8[%c0_89, %c0_90], %158 {strides = array<i32>} : memref<2x128xf32, #tpu.memory_space<vmem>>, vector<2x128xf32>,
      } else {
      }
      %c2_i32 = arith.constant 2 : i32
      %9 = arith.muli %arg2, %c2_i32 : i32
      %10 = tpu.assume_multiple %9, 2 : i32
      %cst = arith.constant 0.000000e+00 : f32
      %11 = vector.broadcast %cst : f32 to vector<16x128xf32>
      %cst_4 = arith.constant 0.000000e+00 : f32
      %12 = vector.broadcast %cst_4 : f32 to vector<16x128xf32>
      %cst_5 = arith.constant 0.000000e+00 : f32
      %13 = vector.broadcast %cst_5 : f32 to vector<16x128xf32>
      %cst_6 = arith.constant 0.000000e+00 : f32
      %14 = vector.broadcast %cst_6 : f32 to vector<16x128xf32>
      %c0_i32_7 = arith.constant 0 : i32
      %15 = arith.addi %10, %c0_i32_7 : i32
      %c0 = arith.constant 0 : index
      %16 = arith.index_cast %15 : i32 to index
      %c0_8 = arith.constant 0 : index
      %c0_9 = arith.constant 0 : index
      %17 = vector.load %arg3[%c0, %16, %c0_8, %c0_9] : memref<1x10x10x8xf32, #tpu.memory_space<vmem>>, vector<1x2x8x8xf32>
      %18 = vector.shape_cast %17 : vector<1x2x8x8xf32> to vector<2x8x8xf32>
      %19 = vector.shape_cast %18 : vector<2x8x8xf32> to vector<16x8xf32>
      %c0_10 = arith.constant 0 : index
      %c0_11 = arith.constant 0 : index
      %20 = vector.load %arg4[%c0_10, %c0_11] : memref<8x2048xf32, #tpu.memory_space<vmem>>, vector<8x128xf32>
      %cst_12 = arith.constant dense<0.000000e+00> : vector<16x128xf32>
      %21 = tpu.matmul %19, %20, %cst_12 {dimension_numbers = #tpu.dot_dimension_numbers<[1], [0], [0], [1], [0, 0, 1, 1], [], []>} : vector<16x8xf32>, vector<8x128xf32>, vector<16x128xf32> -> vector<16x128xf32>
      %22 = arith.addf %11, %21 : vector<16x128xf32>
      %c0_i32_13 = arith.constant 0 : i32
      %23 = arith.addi %10, %c0_i32_13 : i32
      %c0_14 = arith.constant 0 : index
      %24 = arith.index_cast %23 : i32 to index
      %c1 = arith.constant 1 : index
      %c0_15 = arith.constant 0 : index
      %25 = vector.load %arg3[%c0_14, %24, %c1, %c0_15] : memref<1x10x10x8xf32, #tpu.memory_space<vmem>>, vector<1x2x8x8xf32>
      %26 = vector.shape_cast %25 : vector<1x2x8x8xf32> to vector<2x8x8xf32>
      %27 = vector.shape_cast %26 : vector<2x8x8xf32> to vector<16x8xf32>
      %c0_16 = arith.constant 0 : index
      %c128 = arith.constant 128 : index
      %28 = vector.load %arg4[%c0_16, %c128] : memref<8x2048xf32, #tpu.memory_space<vmem>>, vector<8x256xf32>
      %cst_17 = arith.constant dense<0.000000e+00> : vector<16x256xf32>
      %29 = tpu.matmul %27, %28, %cst_17 {dimension_numbers = #tpu.dot_dimension_numbers<[1], [0], [0], [1], [0, 0, 1, 1], [], []>} : vector<16x8xf32>, vector<8x256xf32>, vector<16x256xf32> -> vector<16x256xf32>
      %30 = vector.extract_strided_slice %29 {offsets = [0, 0], sizes = [16, 128], strides = [1, 1]} : vector<16x256xf32> to vector<16x128xf32>
      %31 = arith.addf %22, %30 : vector<16x128xf32>
      %32 = vector.extract_strided_slice %29 {offsets = [0, 128], sizes = [16, 128], strides = [1, 1]} : vector<16x256xf32> to vector<16x128xf32>
      %33 = arith.addf %12, %32 : vector<16x128xf32>
      %c0_i32_18 = arith.constant 0 : i32
      %34 = arith.addi %10, %c0_i32_18 : i32
      %c0_19 = arith.constant 0 : index
      %35 = arith.index_cast %34 : i32 to index
      %c2 = arith.constant 2 : index
      %c0_20 = arith.constant 0 : index
      %36 = vector.load %arg3[%c0_19, %35, %c2, %c0_20] : memref<1x10x10x8xf32, #tpu.memory_space<vmem>>, vector<1x2x8x8xf32>
      %37 = vector.shape_cast %36 : vector<1x2x8x8xf32> to vector<2x8x8xf32>
      %38 = vector.shape_cast %37 : vector<2x8x8xf32> to vector<16x8xf32>
      %c0_21 = arith.constant 0 : index
      %c384 = arith.constant 384 : index
      %39 = vector.load %arg4[%c0_21, %c384] : memref<8x2048xf32, #tpu.memory_space<vmem>>, vector<8x128xf32>
      %cst_22 = arith.constant dense<0.000000e+00> : vector<16x128xf32>
      %40 = tpu.matmul %38, %39, %cst_22 {dimension_numbers = #tpu.dot_dimension_numbers<[1], [0], [0], [1], [0, 0, 1, 1], [], []>} : vector<16x8xf32>, vector<8x128xf32>, vector<16x128xf32> -> vector<16x128xf32>
      %41 = arith.addf %33, %40 : vector<16x128xf32>
      %c1_i32_23 = arith.constant 1 : i32
      %42 = arith.addi %10, %c1_i32_23 : i32
      %c0_24 = arith.constant 0 : index
      %43 = arith.index_cast %42 : i32 to index
      %c0_25 = arith.constant 0 : index
      %c0_26 = arith.constant 0 : index
      %44 = vector.load %arg3[%c0_24, %43, %c0_25, %c0_26] : memref<1x10x10x8xf32, #tpu.memory_space<vmem>>, vector<1x2x8x8xf32>
      %45 = vector.shape_cast %44 : vector<1x2x8x8xf32> to vector<2x8x8xf32>
      %46 = vector.shape_cast %45 : vector<2x8x8xf32> to vector<16x8xf32>
      %c0_27 = arith.constant 0 : index
      %c512 = arith.constant 512 : index
      %47 = vector.load %arg4[%c0_27, %c512] : memref<8x2048xf32, #tpu.memory_space<vmem>>, vector<8x256xf32>
      %cst_28 = arith.constant dense<0.000000e+00> : vector<16x256xf32>
      %48 = tpu.matmul %46, %47, %cst_28 {dimension_numbers = #tpu.dot_dimension_numbers<[1], [0], [0], [1], [0, 0, 1, 1], [], []>} : vector<16x8xf32>, vector<8x256xf32>, vector<16x256xf32> -> vector<16x256xf32>
      %49 = vector.extract_strided_slice %48 {offsets = [0, 0], sizes = [16, 128], strides = [1, 1]} : vector<16x256xf32> to vector<16x128xf32>
      %50 = arith.addf %31, %49 : vector<16x128xf32>
      %51 = vector.extract_strided_slice %48 {offsets = [0, 128], sizes = [16, 128], strides = [1, 1]} : vector<16x256xf32> to vector<16x128xf32>
      %52 = arith.addf %13, %51 : vector<16x128xf32>
      %c1_i32_29 = arith.constant 1 : i32
      %53 = arith.addi %10, %c1_i32_29 : i32
      %c0_30 = arith.constant 0 : index
      %54 = arith.index_cast %53 : i32 to index
      %c1_31 = arith.constant 1 : index
      %c0_32 = arith.constant 0 : index
      %55 = vector.load %arg3[%c0_30, %54, %c1_31, %c0_32] : memref<1x10x10x8xf32, #tpu.memory_space<vmem>>, vector<1x2x8x8xf32>
      %56 = vector.shape_cast %55 : vector<1x2x8x8xf32> to vector<2x8x8xf32>
      %57 = vector.shape_cast %56 : vector<2x8x8xf32> to vector<16x8xf32>
      %c0_33 = arith.constant 0 : index
      %c768 = arith.constant 768 : index
      %58 = vector.load %arg4[%c0_33, %c768] : memref<8x2048xf32, #tpu.memory_space<vmem>>, vector<8x512xf32>
      %cst_34 = arith.constant dense<0.000000e+00> : vector<16x512xf32>
      %59 = tpu.matmul %57, %58, %cst_34 {dimension_numbers = #tpu.dot_dimension_numbers<[1], [0], [0], [1], [0, 0, 1, 1], [], []>} : vector<16x8xf32>, vector<8x512xf32>, vector<16x512xf32> -> vector<16x512xf32>
      %60 = vector.extract_strided_slice %59 {offsets = [0, 0], sizes = [16, 128], strides = [1, 1]} : vector<16x512xf32> to vector<16x128xf32>
      %61 = arith.addf %50, %60 : vector<16x128xf32>
      %62 = vector.extract_strided_slice %59 {offsets = [0, 128], sizes = [16, 128], strides = [1, 1]} : vector<16x512xf32> to vector<16x128xf32>
      %63 = arith.addf %41, %62 : vector<16x128xf32>
      %64 = vector.extract_strided_slice %59 {offsets = [0, 256], sizes = [16, 128], strides = [1, 1]} : vector<16x512xf32> to vector<16x128xf32>
      %65 = arith.addf %52, %64 : vector<16x128xf32>
      %66 = vector.extract_strided_slice %59 {offsets = [0, 384], sizes = [16, 128], strides = [1, 1]} : vector<16x512xf32> to vector<16x128xf32>
      %67 = arith.addf %14, %66 : vector<16x128xf32>
      %c1_i32_35 = arith.constant 1 : i32
      %68 = arith.addi %10, %c1_i32_35 : i32
      %c0_36 = arith.constant 0 : index
      %69 = arith.index_cast %68 : i32 to index
      %c2_37 = arith.constant 2 : index
      %c0_38 = arith.constant 0 : index
      %70 = vector.load %arg3[%c0_36, %69, %c2_37, %c0_38] : memref<1x10x10x8xf32, #tpu.memory_space<vmem>>, vector<1x2x8x8xf32>
      %71 = vector.shape_cast %70 : vector<1x2x8x8xf32> to vector<2x8x8xf32>
      %72 = vector.shape_cast %71 : vector<2x8x8xf32> to vector<16x8xf32>
      %c0_39 = arith.constant 0 : index
      %c1280 = arith.constant 1280 : index
      %73 = vector.load %arg4[%c0_39, %c1280] : memref<8x2048xf32, #tpu.memory_space<vmem>>, vector<8x256xf32>
      %cst_40 = arith.constant dense<0.000000e+00> : vector<16x256xf32>
      %74 = tpu.matmul %72, %73, %cst_40 {dimension_numbers = #tpu.dot_dimension_numbers<[1], [0], [0], [1], [0, 0, 1, 1], [], []>} : vector<16x8xf32>, vector<8x256xf32>, vector<16x256xf32> -> vector<16x256xf32>
      %75 = vector.extract_strided_slice %74 {offsets = [0, 0], sizes = [16, 128], strides = [1, 1]} : vector<16x256xf32> to vector<16x128xf32>
      %76 = arith.addf %63, %75 : vector<16x128xf32>
      %77 = vector.extract_strided_slice %74 {offsets = [0, 128], sizes = [16, 128], strides = [1, 1]} : vector<16x256xf32> to vector<16x128xf32>
      %78 = arith.addf %67, %77 : vector<16x128xf32>
      %c2_i32_41 = arith.constant 2 : i32
      %79 = arith.addi %10, %c2_i32_41 : i32
      %c0_42 = arith.constant 0 : index
      %80 = arith.index_cast %79 : i32 to index
      %c0_43 = arith.constant 0 : index
      %c0_44 = arith.constant 0 : index
      %81 = vector.load %arg3[%c0_42, %80, %c0_43, %c0_44] : memref<1x10x10x8xf32, #tpu.memory_space<vmem>>, vector<1x2x8x8xf32>
      %82 = vector.shape_cast %81 : vector<1x2x8x8xf32> to vector<2x8x8xf32>
      %83 = vector.shape_cast %82 : vector<2x8x8xf32> to vector<16x8xf32>
      %c0_45 = arith.constant 0 : index
      %c1536 = arith.constant 1536 : index
      %84 = vector.load %arg4[%c0_45, %c1536] : memref<8x2048xf32, #tpu.memory_space<vmem>>, vector<8x128xf32>
      %cst_46 = arith.constant dense<0.000000e+00> : vector<16x128xf32>
      %85 = tpu.matmul %83, %84, %cst_46 {dimension_numbers = #tpu.dot_dimension_numbers<[1], [0], [0], [1], [0, 0, 1, 1], [], []>} : vector<16x8xf32>, vector<8x128xf32>, vector<16x128xf32> -> vector<16x128xf32>
      %86 = arith.addf %65, %85 : vector<16x128xf32>
      %c2_i32_47 = arith.constant 2 : i32
      %87 = arith.addi %10, %c2_i32_47 : i32
      %c0_48 = arith.constant 0 : index
      %88 = arith.index_cast %87 : i32 to index
      %c1_49 = arith.constant 1 : index
      %c0_50 = arith.constant 0 : index
      %89 = vector.load %arg3[%c0_48, %88, %c1_49, %c0_50] : memref<1x10x10x8xf32, #tpu.memory_space<vmem>>, vector<1x2x8x8xf32>
      %90 = vector.shape_cast %89 : vector<1x2x8x8xf32> to vector<2x8x8xf32>
      %91 = vector.shape_cast %90 : vector<2x8x8xf32> to vector<16x8xf32>
      %c0_51 = arith.constant 0 : index
      %c1664 = arith.constant 1664 : index
      %92 = vector.load %arg4[%c0_51, %c1664] : memref<8x2048xf32, #tpu.memory_space<vmem>>, vector<8x256xf32>
      %cst_52 = arith.constant dense<0.000000e+00> : vector<16x256xf32>
      %93 = tpu.matmul %91, %92, %cst_52 {dimension_numbers = #tpu.dot_dimension_numbers<[1], [0], [0], [1], [0, 0, 1, 1], [], []>} : vector<16x8xf32>, vector<8x256xf32>, vector<16x256xf32> -> vector<16x256xf32>
      %94 = vector.extract_strided_slice %93 {offsets = [0, 0], sizes = [16, 128], strides = [1, 1]} : vector<16x256xf32> to vector<16x128xf32>
      %95 = arith.addf %86, %94 : vector<16x128xf32>
      %96 = vector.extract_strided_slice %93 {offsets = [0, 128], sizes = [16, 128], strides = [1, 1]} : vector<16x256xf32> to vector<16x128xf32>
      %97 = arith.addf %78, %96 : vector<16x128xf32>
      %c2_i32_53 = arith.constant 2 : i32
      %98 = arith.addi %10, %c2_i32_53 : i32
      %c0_54 = arith.constant 0 : index
      %99 = arith.index_cast %98 : i32 to index
      %c2_55 = arith.constant 2 : index
      %c0_56 = arith.constant 0 : index
      %100 = vector.load %arg3[%c0_54, %99, %c2_55, %c0_56] : memref<1x10x10x8xf32, #tpu.memory_space<vmem>>, vector<1x2x8x8xf32>
      %101 = vector.shape_cast %100 : vector<1x2x8x8xf32> to vector<2x8x8xf32>
      %102 = vector.shape_cast %101 : vector<2x8x8xf32> to vector<16x8xf32>
      %c0_57 = arith.constant 0 : index
      %c1920 = arith.constant 1920 : index
      %103 = vector.load %arg4[%c0_57, %c1920] : memref<8x2048xf32, #tpu.memory_space<vmem>>, vector<8x128xf32>
      %cst_58 = arith.constant dense<0.000000e+00> : vector<16x128xf32>
      %104 = tpu.matmul %102, %103, %cst_58 {dimension_numbers = #tpu.dot_dimension_numbers<[1], [0], [0], [1], [0, 0, 1, 1], [], []>} : vector<16x8xf32>, vector<8x128xf32>, vector<16x128xf32> -> vector<16x128xf32>
      %105 = arith.addf %97, %104 : vector<16x128xf32>
      %cst_59 = arith.constant 0.000000e+00 : f32
      %106 = vector.broadcast %cst_59 : f32 to vector<1x128xf32>
      %cst_60 = arith.constant 0.000000e+00 : f32
      %107 = vector.broadcast %cst_60 : f32 to vector<1x128xf32>
      %108 = arith.index_cast %arg2 : i32 to index
      %c0_61 = arith.constant 0 : index
      %c0_62 = arith.constant 0 : index
      %c0_63 = arith.constant 0 : index
      %109 = vector.load %arg7[%108, %c0_61, %c0_62, %c0_63] : memref<4x4x16x128xf32, #tpu.memory_space<vmem>>, vector<1x1x16x128xf32>
      %110 = vector.shape_cast %109 : vector<1x1x16x128xf32> to vector<16x128xf32>
      %111 = vector.shape_cast %61 : vector<16x128xf32> to vector<1x1x16x128xf32>
      tpu.vector_store %arg7[%108, %c0_61, %c0_62, %c0_63], %111 {strides = array<i32>} : memref<4x4x16x128xf32, #tpu.memory_space<vmem>>, vector<1x1x16x128xf32>,
      %cst_64 = arith.constant dense<0.000000e+00> : vector<128xf32>
      %112 = vector.multi_reduction <add>, %61, %cst_64 [0] : vector<16x128xf32> to vector<128xf32>
      %113 = vector.shape_cast %112 : vector<128xf32> to vector<1x128xf32>
      %114 = arith.addf %106, %113 : vector<1x128xf32>
      %115 = arith.mulf %61, %61 : vector<16x128xf32>
      %cst_65 = arith.constant dense<0.000000e+00> : vector<128xf32>
      %116 = vector.multi_reduction <add>, %115, %cst_65 [0] : vector<16x128xf32> to vector<128xf32>
      %117 = vector.shape_cast %116 : vector<128xf32> to vector<1x128xf32>
      %118 = arith.addf %107, %117 : vector<1x128xf32>
      %119 = arith.index_cast %arg2 : i32 to index
      %c1_66 = arith.constant 1 : index
      %c0_67 = arith.constant 0 : index
      %c0_68 = arith.constant 0 : index
      %120 = vector.load %arg7[%119, %c1_66, %c0_67, %c0_68] : memref<4x4x16x128xf32, #tpu.memory_space<vmem>>, vector<1x1x16x128xf32>
      %121 = vector.shape_cast %120 : vector<1x1x16x128xf32> to vector<16x128xf32>
      %122 = vector.shape_cast %76 : vector<16x128xf32> to vector<1x1x16x128xf32>
      tpu.vector_store %arg7[%119, %c1_66, %c0_67, %c0_68], %122 {strides = array<i32>} : memref<4x4x16x128xf32, #tpu.memory_space<vmem>>, vector<1x1x16x128xf32>,
      %cst_69 = arith.constant dense<0.000000e+00> : vector<128xf32>
      %123 = vector.multi_reduction <add>, %76, %cst_69 [0] : vector<16x128xf32> to vector<128xf32>
      %124 = vector.shape_cast %123 : vector<128xf32> to vector<1x128xf32>
      %125 = arith.addf %114, %124 : vector<1x128xf32>
      %126 = arith.mulf %76, %76 : vector<16x128xf32>
      %cst_70 = arith.constant dense<0.000000e+00> : vector<128xf32>
      %127 = vector.multi_reduction <add>, %126, %cst_70 [0] : vector<16x128xf32> to vector<128xf32>
      %128 = vector.shape_cast %127 : vector<128xf32> to vector<1x128xf32>
      %129 = arith.addf %118, %128 : vector<1x128xf32>
      %130 = arith.index_cast %arg2 : i32 to index
      %c2_71 = arith.constant 2 : index
      %c0_72 = arith.constant 0 : index
      %c0_73 = arith.constant 0 : index
      %131 = vector.load %arg7[%130, %c2_71, %c0_72, %c0_73] : memref<4x4x16x128xf32, #tpu.memory_space<vmem>>, vector<1x1x16x128xf32>
      %132 = vector.shape_cast %131 : vector<1x1x16x128xf32> to vector<16x128xf32>
      %133 = vector.shape_cast %95 : vector<16x128xf32> to vector<1x1x16x128xf32>
      tpu.vector_store %arg7[%130, %c2_71, %c0_72, %c0_73], %133 {strides = array<i32>} : memref<4x4x16x128xf32, #tpu.memory_space<vmem>>, vector<1x1x16x128xf32>,
      %cst_74 = arith.constant dense<0.000000e+00> : vector<128xf32>
      %134 = vector.multi_reduction <add>, %95, %cst_74 [0] : vector<16x128xf32> to vector<128xf32>
      %135 = vector.shape_cast %134 : vector<128xf32> to vector<1x128xf32>
      %136 = arith.addf %125, %135 : vector<1x128xf32>
      %137 = arith.mulf %95, %95 : vector<16x128xf32>
      %cst_75 = arith.constant dense<0.000000e+00> : vector<128xf32>
      %138 = vector.multi_reduction <add>, %137, %cst_75 [0] : vector<16x128xf32> to vector<128xf32>
      %139 = vector.shape_cast %138 : vector<128xf32> to vector<1x128xf32>
      %140 = arith.addf %129, %139 : vector<1x128xf32>
      %141 = arith.index_cast %arg2 : i32 to index
      %c3 = arith.constant 3 : index
      %c0_76 = arith.constant 0 : index
      %c0_77 = arith.constant 0 : index
      %142 = vector.load %arg7[%141, %c3, %c0_76, %c0_77] : memref<4x4x16x128xf32, #tpu.memory_space<vmem>>, vector<1x1x16x128xf32>
      %143 = vector.shape_cast %142 : vector<1x1x16x128xf32> to vector<16x128xf32>
      %144 = vector.shape_cast %105 : vector<16x128xf32> to vector<1x1x16x128xf32>
      tpu.vector_store %arg7[%141, %c3, %c0_76, %c0_77], %144 {strides = array<i32>} : memref<4x4x16x128xf32, #tpu.memory_space<vmem>>, vector<1x1x16x128xf32>,
      %cst_78 = arith.constant dense<0.000000e+00> : vector<128xf32>
      %145 = vector.multi_reduction <add>, %105, %cst_78 [0] : vector<16x128xf32> to vector<128xf32>
      %146 = vector.shape_cast %145 : vector<128xf32> to vector<1x128xf32>
      %147 = arith.addf %136, %146 : vector<1x128xf32>
      %148 = arith.mulf %105, %105 : vector<16x128xf32>
      %cst_79 = arith.constant dense<0.000000e+00> : vector<128xf32>
      %149 = vector.multi_reduction <add>, %148, %cst_79 [0] : vector<16x128xf32> to vector<128xf32>
      %150 = vector.shape_cast %149 : vector<128xf32> to vector<1x128xf32>
      %151 = arith.addf %140, %150 : vector<1x128xf32>
      %c0_80 = arith.constant 0 : index
      %c0_81 = arith.constant 0 : index
      %152 = vector.load %arg8[%c0_80, %c0_81] : memref<2x128xf32, #tpu.memory_space<vmem>>, vector<1x128xf32>
      %153 = arith.addf %152, %147 : vector<1x128xf32>
      %c0_82 = arith.constant 0 : index
      %c0_83 = arith.constant 0 : index
      %154 = vector.load %arg8[%c0_82, %c0_83] : memref<2x128xf32, #tpu.memory_space<vmem>>, vector<1x128xf32>
      tpu.vector_store %arg8[%c0_82, %c0_83], %153 {strides = array<i32>} : memref<2x128xf32, #tpu.memory_space<vmem>>, vector<1x128xf32>,
      %c1_84 = arith.constant 1 : index
      %c0_85 = arith.constant 0 : index
      %155 = vector.load %arg8[%c1_84, %c0_85] : memref<2x128xf32, #tpu.memory_space<vmem>>, vector<1x128xf32>
      %156 = arith.addf %155, %151 : vector<1x128xf32>
      %c1_86 = arith.constant 1 : index
      %c0_87 = arith.constant 0 : index
      %157 = vector.load %arg8[%c1_86, %c0_87] : memref<2x128xf32, #tpu.memory_space<vmem>>, vector<1x128xf32>
      tpu.vector_store %arg8[%c1_86, %c0_87], %156 {strides = array<i32>} : memref<2x128xf32, #tpu.memory_space<vmem>>, vector<1x128xf32>,
    } else {
    }
    %c1_i32 = arith.constant 1 : i32
    %3 = arith.cmpi eq, %arg1, %c1_i32 : i32
    %4 = arith.extui %3 : i1 to i32
    %c0_i32_1 = arith.constant 0 : i32
    %5 = arith.cmpi ne, %4, %c0_i32_1 : i32
    scf.if %5 {
      %c0_i32_2 = arith.constant 0 : i32
      %6 = arith.cmpi eq, %arg2, %c0_i32_2 : i32
      %7 = arith.extui %6 : i1 to i32
      %c0_i32_3 = arith.constant 0 : i32
      %8 = arith.cmpi ne, %7, %c0_i32_3 : i32
      scf.if %8 {
        %c0_43 = arith.constant 0 : index
        %c0_44 = arith.constant 0 : index
        %71 = vector.load %arg8[%c0_43, %c0_44] : memref<2x128xf32, #tpu.memory_space<vmem>>, vector<1x128xf32>
        %c1_45 = arith.constant 1 : index
        %c0_46 = arith.constant 0 : index
        %72 = vector.load %arg8[%c1_45, %c0_46] : memref<2x128xf32, #tpu.memory_space<vmem>>, vector<1x128xf32>
        %cst_47 = arith.constant 3.906250e-03 : f32
        %73 = vector.broadcast %cst_47 : f32 to vector<1x128xf32>
        %74 = arith.mulf %71, %73 : vector<1x128xf32>
        %75 = arith.mulf %71, %74 : vector<1x128xf32>
        %76 = arith.subf %72, %75 : vector<1x128xf32>
        %cst_48 = arith.constant 0.00392156886 : f32
        %77 = vector.broadcast %cst_48 : f32 to vector<1x128xf32>
        %78 = arith.mulf %76, %77 : vector<1x128xf32>
        %cst_49 = arith.constant 0.000000e+00 : f32
        %79 = vector.broadcast %cst_49 : f32 to vector<1x128xf32>
        %80 = arith.maximumf %78, %79 : vector<1x128xf32>
        %cst_50 = arith.constant 1.100000e-05 : f32
        %81 = vector.broadcast %cst_50 : f32 to vector<1x128xf32>
        %82 = arith.addf %80, %81 : vector<1x128xf32>
        %83 = math.rsqrt %82 : vector<1x128xf32>
        %84 = vector.shape_cast %71 : vector<1x128xf32> to vector<1x1x128xf32>
        %cst_51 = arith.constant dense<0.000000e+00> : vector<1xf32>
        %85 = vector.multi_reduction <add>, %84, %cst_51 [1, 2] : vector<1x1x128xf32> to vector<1xf32>
        %86 = vector.shape_cast %85 : vector<1xf32> to vector<1x1x1xf32>
        %87 = vector.extract %86[0, 0, 0] : f32 from vector<1x1x1xf32>
        %88 = vector.broadcast %87 : f32 to vector<1x1xf32>
        %89 = vector.shape_cast %72 : vector<1x128xf32> to vector<1x1x128xf32>
        %cst_52 = arith.constant dense<0.000000e+00> : vector<1xf32>
        %90 = vector.multi_reduction <add>, %89, %cst_52 [1, 2] : vector<1x1x128xf32> to vector<1xf32>
        %91 = vector.shape_cast %90 : vector<1xf32> to vector<1x1x1xf32>
        %92 = vector.extract %91[0, 0, 0] : f32 from vector<1x1x1xf32>
        %93 = vector.broadcast %92 : f32 to vector<1x1xf32>
        %cst_53 = arith.constant 9.765625E-4 : f32
        %94 = vector.broadcast %cst_53 : f32 to vector<1x1xf32>
        %95 = arith.mulf %88, %94 : vector<1x1xf32>
        %96 = arith.mulf %88, %95 : vector<1x1xf32>
        %97 = arith.subf %93, %96 : vector<1x1xf32>
        %cst_54 = arith.constant 9.77517105E-4 : f32
        %98 = vector.broadcast %cst_54 : f32 to vector<1x1xf32>
        %99 = arith.mulf %97, %98 : vector<1x1xf32>
        %cst_55 = arith.constant 0.000000e+00 : f32
        %100 = vector.broadcast %cst_55 : f32 to vector<1x1xf32>
        %101 = arith.maximumf %99, %100 : vector<1x1xf32>
        %cst_56 = arith.constant 1.100000e-05 : f32
        %102 = vector.broadcast %cst_56 : f32 to vector<1x1xf32>
        %103 = arith.addf %101, %102 : vector<1x1xf32>
        %104 = math.rsqrt %103 : vector<1x1xf32>
        %c0_57 = arith.constant 0 : index
        %c0_58 = arith.constant 0 : index
        %105 = vector.load %arg5[%c0_57, %c0_58] : memref<3x128xf32, #tpu.memory_space<vmem>>, vector<1x128xf32>
        %c1_59 = arith.constant 1 : index
        %c0_60 = arith.constant 0 : index
        %106 = vector.load %arg5[%c1_59, %c0_60] : memref<3x128xf32, #tpu.memory_space<vmem>>, vector<1x128xf32>
        %c2_61 = arith.constant 2 : index
        %c0_62 = arith.constant 0 : index
        %107 = vector.load %arg5[%c2_61, %c0_62] : memref<3x128xf32, #tpu.memory_space<vmem>>, vector<1x128xf32>
        %108 = arith.mulf %105, %83 : vector<1x128xf32>
        %cst_63 = arith.constant 1.000000e+00 : f32
        %109 = vector.broadcast %cst_63 : f32 to vector<1x128xf32>
        %110 = arith.subf %109, %105 : vector<1x128xf32>
        %111 = vector.broadcast %104 : vector<1x1xf32> to vector<1x128xf32>
        %112 = arith.mulf %110, %111 : vector<1x128xf32>
        %113 = arith.addf %108, %112 : vector<1x128xf32>
        %114 = arith.mulf %106, %113 : vector<1x128xf32>
        %c0_64 = arith.constant 0 : index
        %c0_65 = arith.constant 0 : index
        %115 = vector.load %arg9[%c0_64, %c0_65] : memref<2x128xf32, #tpu.memory_space<vmem>>, vector<1x128xf32>
        tpu.vector_store %arg9[%c0_64, %c0_65], %114 {strides = array<i32>} : memref<2x128xf32, #tpu.memory_space<vmem>>, vector<1x128xf32>,
        %116 = arith.mulf %108, %74 : vector<1x128xf32>
        %117 = vector.broadcast %95 : vector<1x1xf32> to vector<1x128xf32>
        %118 = arith.mulf %112, %117 : vector<1x128xf32>
        %119 = arith.addf %116, %118 : vector<1x128xf32>
        %120 = arith.mulf %106, %119 : vector<1x128xf32>
        %121 = arith.subf %107, %120 : vector<1x128xf32>
        %c1_66 = arith.constant 1 : index
        %c0_67 = arith.constant 0 : index
        %122 = vector.load %arg9[%c1_66, %c0_67] : memref<2x128xf32, #tpu.memory_space<vmem>>, vector<1x128xf32>
        tpu.vector_store %arg9[%c1_66, %c0_67], %121 {strides = array<i32>} : memref<2x128xf32, #tpu.memory_space<vmem>>, vector<1x128xf32>,
      } else {
      }
      %c0 = arith.constant 0 : index
      %c0_4 = arith.constant 0 : index
      %9 = vector.load %arg9[%c0, %c0_4] : memref<2x128xf32, #tpu.memory_space<vmem>>, vector<1x128xf32>
      %c1 = arith.constant 1 : index
      %c0_5 = arith.constant 0 : index
      %10 = vector.load %arg9[%c1, %c0_5] : memref<2x128xf32, #tpu.memory_space<vmem>>, vector<1x128xf32>
      %11 = arith.index_cast %arg2 : i32 to index
      %c0_6 = arith.constant 0 : index
      %c0_7 = arith.constant 0 : index
      %c0_8 = arith.constant 0 : index
      %12 = vector.load %arg7[%11, %c0_6, %c0_7, %c0_8] : memref<4x4x16x128xf32, #tpu.memory_space<vmem>>, vector<1x1x16x128xf32>
      %13 = vector.shape_cast %12 : vector<1x1x16x128xf32> to vector<16x128xf32>
      %14 = vector.broadcast %9 : vector<1x128xf32> to vector<16x128xf32>
      %15 = arith.mulf %13, %14 : vector<16x128xf32>
      %16 = vector.broadcast %10 : vector<1x128xf32> to vector<16x128xf32>
      %17 = arith.addf %15, %16 : vector<16x128xf32>
      %cst = arith.constant 0.000000e+00 : f32
      %18 = vector.broadcast %cst : f32 to vector<16x128xf32>
      %19 = arith.cmpf oge, %17, %18 : vector<16x128xf32>
      %cst_9 = arith.constant 2.000000e-01 : f32
      %20 = vector.broadcast %cst_9 : f32 to vector<16x128xf32>
      %21 = arith.mulf %20, %17 : vector<16x128xf32>
      %22 = arith.select %19, %17, %21 : vector<16x128xi1>, vector<16x128xf32>
      %c0_10 = arith.constant 0 : index
      %c0_11 = arith.constant 0 : index
      %c0_12 = arith.constant 0 : index
      %c0_13 = arith.constant 0 : index
      %c0_14 = arith.constant 0 : index
      %23 = vector.load %arg6[%c0_10, %c0_11, %c0_12, %c0_13, %c0_14] : memref<1x2x2x16x128xf32, #tpu.memory_space<vmem>>, vector<1x1x1x16x128xf32>
      %24 = vector.shape_cast %23 : vector<1x1x1x16x128xf32> to vector<16x128xf32>
      %25 = vector.shape_cast %22 : vector<16x128xf32> to vector<1x1x1x16x128xf32>
      tpu.vector_store %arg6[%c0_10, %c0_11, %c0_12, %c0_13, %c0_14], %25 {strides = array<i32>} : memref<1x2x2x16x128xf32, #tpu.memory_space<vmem>>, vector<1x1x1x16x128xf32>,
      %26 = arith.index_cast %arg2 : i32 to index
      %c1_15 = arith.constant 1 : index
      %c0_16 = arith.constant 0 : index
      %c0_17 = arith.constant 0 : index
      %27 = vector.load %arg7[%26, %c1_15, %c0_16, %c0_17] : memref<4x4x16x128xf32, #tpu.memory_space<vmem>>, vector<1x1x16x128xf32>
      %28 = vector.shape_cast %27 : vector<1x1x16x128xf32> to vector<16x128xf32>
      %29 = vector.broadcast %9 : vector<1x128xf32> to vector<16x128xf32>
      %30 = arith.mulf %28, %29 : vector<16x128xf32>
      %31 = vector.broadcast %10 : vector<1x128xf32> to vector<16x128xf32>
      %32 = arith.addf %30, %31 : vector<16x128xf32>
      %cst_18 = arith.constant 0.000000e+00 : f32
      %33 = vector.broadcast %cst_18 : f32 to vector<16x128xf32>
      %34 = arith.cmpf oge, %32, %33 : vector<16x128xf32>
      %cst_19 = arith.constant 2.000000e-01 : f32
      %35 = vector.broadcast %cst_19 : f32 to vector<16x128xf32>
      %36 = arith.mulf %35, %32 : vector<16x128xf32>
      %37 = arith.select %34, %32, %36 : vector<16x128xi1>, vector<16x128xf32>
      %c0_20 = arith.constant 0 : index
      %c0_21 = arith.constant 0 : index
      %c1_22 = arith.constant 1 : index
      %c0_23 = arith.constant 0 : index
      %c0_24 = arith.constant 0 : index
      %38 = vector.load %arg6[%c0_20, %c0_21, %c1_22, %c0_23, %c0_24] : memref<1x2x2x16x128xf32, #tpu.memory_space<vmem>>, vector<1x1x1x16x128xf32>
      %39 = vector.shape_cast %38 : vector<1x1x1x16x128xf32> to vector<16x128xf32>
      %40 = vector.shape_cast %37 : vector<16x128xf32> to vector<1x1x1x16x128xf32>
      tpu.vector_store %arg6[%c0_20, %c0_21, %c1_22, %c0_23, %c0_24], %40 {strides = array<i32>} : memref<1x2x2x16x128xf32, #tpu.memory_space<vmem>>, vector<1x1x1x16x128xf32>,
      %41 = arith.index_cast %arg2 : i32 to index
      %c2 = arith.constant 2 : index
      %c0_25 = arith.constant 0 : index
      %c0_26 = arith.constant 0 : index
      %42 = vector.load %arg7[%41, %c2, %c0_25, %c0_26] : memref<4x4x16x128xf32, #tpu.memory_space<vmem>>, vector<1x1x16x128xf32>
      %43 = vector.shape_cast %42 : vector<1x1x16x128xf32> to vector<16x128xf32>
      %44 = vector.broadcast %9 : vector<1x128xf32> to vector<16x128xf32>
      %45 = arith.mulf %43, %44 : vector<16x128xf32>
      %46 = vector.broadcast %10 : vector<1x128xf32> to vector<16x128xf32>
      %47 = arith.addf %45, %46 : vector<16x128xf32>
      %cst_27 = arith.constant 0.000000e+00 : f32
      %48 = vector.broadcast %cst_27 : f32 to vector<16x128xf32>
      %49 = arith.cmpf oge, %47, %48 : vector<16x128xf32>
      %cst_28 = arith.constant 2.000000e-01 : f32
      %50 = vector.broadcast %cst_28 : f32 to vector<16x128xf32>
      %51 = arith.mulf %50, %47 : vector<16x128xf32>
      %52 = arith.select %49, %47, %51 : vector<16x128xi1>, vector<16x128xf32>
      %c0_29 = arith.constant 0 : index
      %c1_30 = arith.constant 1 : index
      %c0_31 = arith.constant 0 : index
      %c0_32 = arith.constant 0 : index
      %c0_33 = arith.constant 0 : index
      %53 = vector.load %arg6[%c0_29, %c1_30, %c0_31, %c0_32, %c0_33] : memref<1x2x2x16x128xf32, #tpu.memory_space<vmem>>, vector<1x1x1x16x128xf32>
      %54 = vector.shape_cast %53 : vector<1x1x1x16x128xf32> to vector<16x128xf32>
      %55 = vector.shape_cast %52 : vector<16x128xf32> to vector<1x1x1x16x128xf32>
      tpu.vector_store %arg6[%c0_29, %c1_30, %c0_31, %c0_32, %c0_33], %55 {strides = array<i32>} : memref<1x2x2x16x128xf32, #tpu.memory_space<vmem>>, vector<1x1x1x16x128xf32>,
      %56 = arith.index_cast %arg2 : i32 to index
      %c3 = arith.constant 3 : index
      %c0_34 = arith.constant 0 : index
      %c0_35 = arith.constant 0 : index
      %57 = vector.load %arg7[%56, %c3, %c0_34, %c0_35] : memref<4x4x16x128xf32, #tpu.memory_space<vmem>>, vector<1x1x16x128xf32>
      %58 = vector.shape_cast %57 : vector<1x1x16x128xf32> to vector<16x128xf32>
      %59 = vector.broadcast %9 : vector<1x128xf32> to vector<16x128xf32>
      %60 = arith.mulf %58, %59 : vector<16x128xf32>
      %61 = vector.broadcast %10 : vector<1x128xf32> to vector<16x128xf32>
      %62 = arith.addf %60, %61 : vector<16x128xf32>
      %cst_36 = arith.constant 0.000000e+00 : f32
      %63 = vector.broadcast %cst_36 : f32 to vector<16x128xf32>
      %64 = arith.cmpf oge, %62, %63 : vector<16x128xf32>
      %cst_37 = arith.constant 2.000000e-01 : f32
      %65 = vector.broadcast %cst_37 : f32 to vector<16x128xf32>
      %66 = arith.mulf %65, %62 : vector<16x128xf32>
      %67 = arith.select %64, %62, %66 : vector<16x128xi1>, vector<16x128xf32>
      %c0_38 = arith.constant 0 : index
      %c1_39 = arith.constant 1 : index
      %c1_40 = arith.constant 1 : index
      %c0_41 = arith.constant 0 : index
      %c0_42 = arith.constant 0 : index
      %68 = vector.load %arg6[%c0_38, %c1_39, %c1_40, %c0_41, %c0_42] : memref<1x2x2x16x128xf32, #tpu.memory_space<vmem>>, vector<1x1x1x16x128xf32>
      %69 = vector.shape_cast %68 : vector<1x1x1x16x128xf32> to vector<16x128xf32>
      %70 = vector.shape_cast %67 : vector<16x128xf32> to vector<1x1x1x16x128xf32>
      tpu.vector_store %arg6[%c0_38, %c1_39, %c1_40, %c0_41, %c0_42], %70 {strides = array<i32>} : memref<1x2x2x16x128xf32, #tpu.memory_space<vmem>>, vector<1x1x1x16x128xf32>,
    } else {
    }
    return
  }
  func.func @transform_0(%arg0: i32, %arg1: i32, %arg2: i32) -> (i32, i32, i32, i32) {
    %c0_i32 = arith.constant 0 : i32
    %c0_i32_0 = arith.constant 0 : i32
    %c0_i32_1 = arith.constant 0 : i32
    %c0_i32_2 = arith.constant 0 : i32
    return %arg0, %c0_i32, %c0_i32_0, %c0_i32_1 : i32, i32, i32, i32
  }
  func.func @transform_1(%arg0: i32, %arg1: i32, %arg2: i32) -> (i32, i32) {
    %c0_i32 = arith.constant 0 : i32
    %c0_i32_0 = arith.constant 0 : i32
    %c0_i32_1 = arith.constant 0 : i32
    return %c0_i32, %c0_i32_0 : i32, i32
  }
  func.func @transform_2(%arg0: i32, %arg1: i32, %arg2: i32) -> (i32, i32) {
    %c0_i32 = arith.constant 0 : i32
    %c0_i32_0 = arith.constant 0 : i32
    %c0_i32_1 = arith.constant 0 : i32
    return %c0_i32, %c0_i32_0 : i32, i32
  }
  func.func @transform_3(%arg0: i32, %arg1: i32, %arg2: i32) -> (i32, i32, i32, i32, i32) {
    %0 = arith.muli %arg2, %arg1 : i32
    %c0_i32 = arith.constant 0 : i32
    %c0_i32_0 = arith.constant 0 : i32
    %c0_i32_1 = arith.constant 0 : i32
    %c0_i32_2 = arith.constant 0 : i32
    return %arg0, %c0_i32, %c0_i32_0, %0, %c0_i32_1 : i32, i32, i32, i32, i32
  }
}

</mosaic_0001>

<bundles_post_ra>
// kernel: tpu_custom_call.1
= control target key start
LH: loop header
LB: loop body
LE: loop exit
PB: predicated region body
PF: predicated region fallthrough
CT: control target
= control target key end

     0   :  { %s2102_s0 = inlined_call_operand.vmem [shape: f32[2,10,10,8], index: 0, kind: input, shape index: {}]   ;;  %s2103_s1 = inlined_call_operand.vmem [shape: f32[8,2048], index: 1, kind: input, shape index: {}]   ;;  %s2104_s2 = inlined_call_operand.vmem [shape: f32[3,128], index: 2, kind: input, shape index: {}]   ;;  %s2105_s3 = inlined_call_operand.hbm [shape: f32[2,2,2,64,128], index: 3, kind: output, shape index: {}]  }
   0x1   :  { %2107 = sst [smem:[#allocation10_spill]] %s2102_s0 }
   0x2   :  { %2108 = sst [smem:[#allocation11_spill]] %s2103_s1 }
   0x3   :  { %8 = vsyncpa [#allocation6], 0 }
   0x4   :  { %10 = vsyncpa [#allocation6 + $0x1], 0  ;;  %s1820_s12 = smov 0   ;;  %s1822_s13 = smov 0  }
   0x5   :  { %s1824_s14 = smov 0   ;;  %s1826_s15 = smov 0  }
   0x6   :  { %s1828_s16 = smov 0   ;;  %s1830_s17 = smov 0  }
   0x7   :  { %s1832_s18 = smov 0   ;;  %s1834_s19 = smov 0  }
   0x8   :  { %s1836_s20 = smov 0   ;;  %s1838_s21 = smov 0  }
   0x9 LB: > { %s1478_s22 = sadd.s32 4294967295, %s1789_s21   ;;  %s1479_s23 = sadd.s32 4294967294, %s1789_s21   ;;  %s1789_s21 = sphi %s1838_s21, %s16_s21   ;;  %s1785_s20 = sphi %s1836_s20, %s2122_s20   ;;  %s1781_s19 = sphi %s1834_s19, %s2121_s19   ;;  %s1777_s18 = sphi %s1832_s18, %s2120_s18   ;;  %s1773_s17 = sphi %s1830_s17, %s2119_s17   ;;  %s1769_s16 = sphi %s1828_s16, %s2118_s16   ;;  %s1765_s15 = sphi %s1826_s15, %s2117_s15   ;;  %s1761_s14 = sphi %s1824_s14, %s2116_s14   ;;  %s1757_s13 = sphi %s1822_s13, %s2115_s13   ;;  %s1753_s12 = sphi %s1820_s12, %s2114_s12  }
   0xa   : > { %s28_s24 = sadd.s32 1, %s1777_s18  ;;  %s31_s25 = sadd.s32 1, %s1781_s19 }
   0xb   : > { %p29_p0 = scmp.ge.s32.totalorder %s28_s24, 4  ;;  %s35_s26 = sadd.s32 1, %s1785_s20 }
   0xc   : > { %s107_s27 = smul.u32 %s1777_s18, %s1781_s19  ;;  %p124_p1 = scmp.ne.s32.totalorder %s1761_s14, %s1757_s13 }
   0xd   : > { %s2124_s24 = smov (%p29_p0, %s28_s24), 0  ;;  %s2126_s25 = smov (!%p29_p0, %s31_s25), %s1781_s19 }
   0xe   : > { %p125_p2 = scmp.eq.s32.totalorder %s1478_s22, 15  ;;  %p33_p3 = scmp.ge.s32.totalorder %s2126_s25, 2 }
   0xf   : > { %p130_p4 = scmp.ne.s32.totalorder %s1757_s13, %s1753_s12  ;;  %p131_p6 = scmp.eq.s32.totalorder %s1479_s23, 15 }
  0x10   : > { %p1884_p5 = por %p125_p2, %p124_p1  ;;  %s2128_s25 = smov (%p33_p3, %s2126_s25), 0 }
  0x11   : > { %s2130_s26 = smov (!%p33_p3, %s35_s26), %s1785_s20  ;;  %s108_s29 = smul.u32 %s2128_s25, %s2124_s24 }
  0x12   : > { %p1893_p7 = por %p131_p6, %p130_p4  ;;  %p37_p8 = scmp.ge.s32.totalorder %s2130_s26, 2 }
  0x13   : > { %p1482_p9 = scmp.ge.s32.totalorder %s1789_s21, 1  ;;  %s110_s4 = ssub.s32 %s107_s27, %s108_s29 }
  0x14   : > { %p163_p10 = scmp.lt.s32.totalorder %s1789_s21, 17  ;;  %s2132_s26 = smov (%p37_p8, %s2130_s26), 0 }
  0x15   : > { %s109_s5 = ssub.s32 %s1785_s20, %s2132_s26  ;;  %s114_s7 = sadd.s32 1, %s1761_s14 }
  0x16   : > { %p164_p11 = pnand %p1482_p9, %p163_p10  ;;  %s111_s6 = sor.u32 %s110_s4, %s109_s5 }
  0x17   : > { %p112_p12 = scmp.eq.s32.totalorder %s111_s6, 0  ;;  %s2106_s9 = sand.u32 (!%p164_p11), 1, %s1757_s13  }
  0x18   : > { %167 = sbr.rel (%p164_p11) target bundleno = 583 (0x247), region = 32  ;;  %p187_p13 = scmp.lt.s32.totalorder (!%p164_p11), %s1773_s17, 1 }
  0x19   : > { %s1905_s8 = scalar_select %p112_p12, %s1761_s14, %s114_s7  }
  0x1a   : > { %s1483_s10 = sshll.u32 (!%p164_p11), %s2106_s9, 6  ;;  %s2111_s0 = sld [smem:[#allocation10_spill]] (!%p164_p11) }
  0x1b   : > { %s1915_s4 = scalar_lea.vmem (!%p164_p11), [#allocation5], %s1483_s10  ;;  %p1485_p0 = scmp.ne.s32.totalorder (!%p164_p11), %s1769_s16, 0 }
  0x1d   : > { %s188_s11 = scalar_select %p187_p13, %s1773_s17, 1 }
  0x1e   : > { %197 = sbr.rel (%p1485_p0) target bundleno = 300 (0x12c), region = 36  ;;  %p1486_p1 = scmp.ne.s32.totalorder (!%p1485_p0), %s1765_s15, 0 }
  0x1f   : > { %s1596_s22 = smul.u32 160, %s188_s11 }
  0x21   : > { %s191_s29 = scalar_lea.vmem %s2111_s0, %s1596_s22 }
  0x23   : > { %201 = sbr.rel (%p1486_p1) target bundleno = 42 (0x2a), region = 40 }
  0x28   : > { %v1791_v0 = vmov 0.0  }
  0x29   : > { %202 = vst [vmem:[#allocation3] sm:$0x3] %v1791_v0 }
  0x2a PF: > { %s2112_s1 = sld [smem:[#allocation11_spill]]  ;;  %s1561_s23 = sshll.u32 %s1765_s15, 5  ;;  %vm213_vm0 = vcmask 64512   ;;  %v1792_v6 = vmov 0.0  }
  0x2b   : > { %s1929_s27 = scalar_lea.vmem %s191_s29, %s1561_s23  ;;  %284 = vmatprep.mubr.f32.mxu0 %v1792_v6  ;;  %s1525_s29 = sshll.u32 %s1765_s15, 6 }
  0x2c   : > { %v209_v7 = vld [vmem:[%s1929_s27 + $0x1] sm:$0xff]  ;;  %v207_v9 = vld [vmem:[%s1929_s27 + $0x10] sm:$0xff] }
  0x2d   : > { %v206_v8 = vld [vmem:[%s1929_s27] sm:$0xff]  ;;  %v210_v12 = vld [vmem:[%s1929_s27 + $0x11] sm:$0xff] }
  0x2e   : > { %1578 = vmatprep.mubr.msk.f32.mxu1 %vm213_vm0, %v206_v8  ;;  %v380_v11 = vld [vmem:[%s1929_s27 + $0x2] sm:$0xff]  ;;  %v381_v14 = vld [vmem:[%s1929_s27 + $0x12] sm:$0xff] }
  0x2f   : > { %v1498_v21 = vld [vmem:[%s1929_s27 + $0x20] sm:$0xff]  ;;  %v1514_v27 = vld [vmem:[%s1929_s27 + $0x30] sm:$0xff] }
  0x30   : > { %v212_v1 = vld [vmem:[%s2112_s1 + $0x10] sm:$0xff]  ;;  %v208_v2 = vld [vmem:[%s2112_s1] sm:$0xff]  ;;  %v211_v3 = vld [vmem:[%s2112_s1 + $0x8] sm:$0xff] }
  0x31   : > { %250 = vmatprep.subr.mxu0 %v212_v1  ;;  %1576 = vmatprep.subr.mxu1 %v208_v2  ;;  %v382_v4 = vld [vmem:[%s2112_s1 + $0x18] sm:$0xff]  ;;  %v472_v5 = vld [vmem:[%s2112_s1 + $0x28] sm:$0xff]  ;;  %v471_v10 = vld [vmem:[%s2112_s1 + $0x20] sm:$0xff] }
  0x32   : > { %251 = vmatpush1.msra.mxu0 %v211_v3  ;;  %1577 = vmatpush3.msra.mxu1 %v208_v2  ;;  %v563_v13 = vld [vmem:[%s2112_s1 + $0x38] sm:$0xff]  ;;  %v562_v15 = vld [vmem:[%s2112_s1 + $0x30] sm:$0xff]  ;;  %v565_v17 = vld [vmem:[%s2112_s1 + $0x48] sm:$0xff] }
  0x33   : > { %1489 = vmatmul.mubr.msk.f32.vlgmr.msra.gmra.mxu0 %vm213_vm0, %v209_v7  ;;  %1581 = vmatprep.subr.mxu1 %v382_v4  ;;  %v737_v16 = vld [vmem:[%s2112_s1 + $0x58] sm:$0xff]  ;;  %v736_v18 = vld [vmem:[%s2112_s1 + $0x50] sm:$0xff]  ;;  %v564_v19 = vld [vmem:[%s2112_s1 + $0x40] sm:$0xff] }
  0x34   : > { %1579 = vmatmul.mubr.msk.f32.vlgmr.msra.gmra.mxu1 %vm213_vm0, %v207_v9  ;;  %509 = vmatprep.subr.mxu0 %v472_v5  ;;  %v917_v20 = vld [vmem:[%s2112_s1 + $0x70] sm:$0xff]  ;;  %v830_v22 = vld [vmem:[%s2112_s1 + $0x60] sm:$0xff]  ;;  %v916_v24 = vld [vmem:[%s2112_s1 + $0x68] sm:$0xff] }
  0x35   : > { %1582 = vmatpush3.msra.mxu1 %v382_v4  ;;  %290 = vmatprep.mubr.f32.mxu0 %v1792_v6  ;;  %v1502_v23 = vld [vmem:[%s1929_s27 + $0x21] sm:$0xff]  ;;  %v1007_v25 = vld [vmem:[%s2112_s1 + $0x78] sm:$0xff] }
  0x36   : > { %510 = vmatpush1.msra.mxu0 %v471_v10  ;;  %1583 = vmatprep.mubr.msk.f32.mxu1 %vm213_vm0, %v380_v11  ;;  %v1508_v26 = vld [vmem:[%s1929_s27 + $0x22] sm:$0xff]  ;;  %v1522_v28 = vld [vmem:[%s1929_s27 + $0x32] sm:$0xff] }
  0x37   : > { %1490 = vmatmul.mubr.msk.f32.gmra.mxu0 %vm213_vm0, %v210_v12  ;;  %602 = vmatprep.subr.mxu1 %v563_v13  ;;  %v1518_v29 = vld [vmem:[%s1929_s27 + $0x31] sm:$0xff]  ;;  %s2015_s27 = scalar_lea.vmem [#allocation2], %s1525_s29 }
  0x38   : > { %1584 = vmatmul.mubr.msk.f32.vlgmr.msra.gmra.mxu1 %vm213_vm0, %v381_v14  ;;  %543 = vmatprep.mubr.f32.mxu0 %v1792_v6 }
  0x39   : > { %603 = vmatpush1.msra.mxu1 %v562_v15  ;;  %636 = vmatprep.mubr.f32.mxu1 %v1792_v6 }
  0x3a   : > { %774 = vmatprep.subr.mxu1 %v737_v16  ;;  %679 = vmatprep.subr.mxu0 %v565_v17 }
  0x3b   : > { %1499 = vmatmul.mubr.msk.f32.vlgmr.msra.gmra.mxu0 %vm213_vm0, %v207_v9 }
  0x3c   : > { %1503 = vmatmul.mubr.msk.f32.vlgmr.msra.gmra.mxu1 %vm213_vm0, %v210_v12  ;;  %549 = vmatprep.mubr.f32.mxu0 %v1792_v6 }
  0x3d   : > { %775 = vmatpush1.msra.mxu1 %v736_v18  ;;  %680 = vmatpush1.msra.mxu0 %v564_v19 }
  0x3e   : > { %642 = vmatprep.mubr.f32.mxu1 %v1792_v6  ;;  %954 = vmatprep.subr.mxu1 %v917_v20 }
  0x3f   : > { %1500 = vmatmul.mubr.msk.f32.gmra.mxu0 %vm213_vm0, %v1498_v21  ;;  %1586 = vmatprep.subr.mxu0 %v830_v22 }
  0x40   : > { %1504 = vmatmul.mubr.msk.f32.gmra.mxu1 %vm213_vm0, %v1502_v23  ;;  %713 = vmatprep.mubr.f32.mxu0 %v1792_v6 }
  0x41   : > { %808 = vmatprep.mubr.f32.mxu1 %v1792_v6 }
  0x43   : > { %1505 = vmatmul.mubr.msk.f32.vlgmr.msra.gmra.mxu0 %vm213_vm0, %v210_v12 }
  0x44   : > { %1509 = vmatmul.mubr.msk.f32.vlgmr.msra.gmra.mxu1 %vm213_vm0, %v381_v14  ;;  %719 = vmatprep.mubr.f32.mxu0 %v1792_v6 }
  0x45   : > { %955 = vmatpush1.msra.mxu1 %v916_v24  ;;  %1587 = vmatpush3.msra.mxu0 %v830_v22 }
  0x46   : > { %814 = vmatprep.mubr.f32.mxu1 %v1792_v6  ;;  %1591 = vmatprep.subr.mxu0 %v1007_v25 }
  0x47   : > { %1506 = vmatmul.mubr.msk.f32.gmra.mxu0 %vm213_vm0, %v1502_v23 }
  0x48   : > { %1510 = vmatmul.mubr.msk.f32.gmra.mxu1 %vm213_vm0, %v1508_v26  ;;  %1588 = vmatprep.mubr.msk.f32.mxu0 %vm213_vm0, %v1498_v21 }
  0x49   : > { %988 = vmatprep.mubr.f32.mxu1 %v1792_v6 }
  0x4b   : > { %1589 = vmatmul.mubr.msk.f32.vlgmr.msra.gmra.mxu0 %vm213_vm0, %v1514_v27 }
  0x4c   : > { %1519 = vmatmul.mubr.msk.f32.vlgmr.msra.gmra.mxu1 %vm213_vm0, %v1502_v23  ;;  %1592 = vmatpush3.msra.mxu0 %v1007_v25 }
  0x4d   : > { %1593 = vmatprep.mubr.msk.f32.mxu0 %vm213_vm0, %v1508_v26  ;;  %994 = vmatprep.mubr.f32.mxu1 %v1792_v6 }
  0x4f   : > { %1594 = vmatmul.mubr.msk.f32.vlgmr.msra.gmra.mxu0 %vm213_vm0, %v1522_v28 }
  0x50   : > { %1520 = vmatmul.mubr.msk.f32.gmra.mxu1 %vm213_vm0, %v1518_v29 }
  0xf3   : > { %v286_v30 = vpop.f32.mrf.mxu0 }
  0xf4   : > { %v1580_v31 = vpop.f32.mrf.mxu1 }
  0xf5   : > { %v288_v32 = vpop.f32.mrf.mxu0 }
  0xf6   : > { %v369_v33 = vpop.f32.mrf.mxu1 }
  0xf7   : > { %v292_v34 = vpop.f32.mrf.mxu0  ;;  %v370_v37 = vadd.f32 %v369_v33, %v286_v30 }
  0xf8   : > { %v1585_v35 = vpop.f32.mrf.mxu1  ;;  %v375_v43 = vadd.f32 %v1580_v31, %v292_v34 }
  0xf9   : > { %v294_v36 = vpop.f32.mrf.mxu0 }
  0xfa   : > { %v455_v38 = vpop.f32.mrf.mxu1  ;;  %v465_v56 = vadd.f32 %v1585_v35, %v294_v36 }
  0xfb   : > { %v545_v39 = vpop.f32.mrf.mxu0  ;;  %v464_v49 = vadd.f32 %v455_v38, %v288_v32 }
  0xfc   : > { %v556_v40 = vadd.f32 %v545_v39, %v370_v37  ;;  %v638_v41 = vpop.f32.mrf.mxu1 }
  0xfd   : > { %v547_v42 = vpop.f32.mrf.mxu0 }
  0xfe   : > { %v726_v44 = vadd.f32 %v638_v41, %v556_v40  ;;  %v640_v45 = vpop.f32.mrf.mxu1 }
  0xff   : > { %v551_v46 = vpop.f32.mrf.mxu0  ;;  %v728_v53 = vadd.f32 %v640_v45, %v464_v49 }
 0x100   : > { %1093 = vst [vmem:[%s2015_s27] sm:$0xff] %v726_v44  ;;  %v557_v47 = vadd.f32 %v551_v46, %v375_v43  ;;  %v644_v48 = vpop.f32.mrf.mxu1  ;;  %v1103_v62 = vmul.f32 %v726_v44, %v726_v44 }
 0x101   : > { %v553_v50 = vpop.f32.mrf.mxu0 }
 0x102   : > { %v727_v51 = vadd.f32 %v644_v48, %v557_v47  ;;  %v646_v52 = vpop.f32.mrf.mxu1 }
 0x103   : > { %v715_v54 = vpop.f32.mrf.mxu0  ;;  %v729_v63 = vadd.f32 %v646_v52, %v465_v56 }
 0x104   : > { %1094 = vst [vmem:[%s2015_s27 + $0x8] sm:$0xff] %v727_v51  ;;  %v810_v55 = vpop.f32.mrf.mxu1  ;;  %v1104_v57 = vmul.f32 %v727_v51, %v727_v51  ;;  %v1095_v60 = vadd.f32 %v727_v51, %v726_v44  ;;  %v730_v11 = vadd.f32 %v715_v54, %v547_v42 }
 0x105   : > { %v821_v58 = vadd.f32 %v810_v55, %v728_v53  ;;  %v717_v59 = vpop.f32.mrf.mxu0 }
 0x106   : > { %v812_v61 = vpop.f32.mrf.mxu1  ;;  %v1105_v2 = vadd.f32 %v1104_v57, %v1103_v62  ;;  %v1096_v5 = vrot.slane %v1095_v60, 4 }
 0x107   : > { %1527 = vst [vmem:[%s2015_s27 + $0x10] sm:$0xff] %v821_v58  ;;  %v721_v0 = vpop.f32.mrf.mxu0  ;;  %v1125_v7 = vmul.f32 %v821_v58, %v821_v58  ;;  %v823_v12 = vadd.f32 %v812_v61, %v717_v59 }
 0x108   : > { %v816_v1 = vpop.f32.mrf.mxu1  ;;  %v1106_v14 = vrot.slane %v1105_v2, 4  ;;  %v731_v15 = vadd.f32 %v721_v0, %v553_v50  ;;  %v1097_v19 = vadd.f32 %v1096_v5, %v1095_v60 }
 0x109   : > { %v822_v3 = vadd.f32 %v816_v1, %v729_v63  ;;  %v723_v4 = vpop.f32.mrf.mxu0 }
 0x10a   : > { %v818_v6 = vpop.f32.mrf.mxu1  ;;  %v1107_v29 = vadd.f32 %v1106_v14, %v1105_v2  ;;  %v1098_v38 = vrot.slane %v1097_v19, 2 }
 0x10b   : > { %1528 = vst [vmem:[%s2015_s27 + $0x18] sm:$0xff] %v822_v3  ;;  %v1117_v8 = vadd.f32 %v822_v3, %v821_v58  ;;  %v1126_v9 = vmul.f32 %v822_v3, %v822_v3  ;;  %v1590_v10 = vpop.f32.mrf.mxu0  ;;  %v824_v34 = vadd.f32 %v818_v6, %v723_v4 }
 0x10c   : > { %v990_v13 = vpop.f32.mrf.mxu1  ;;  %v913_v24 = vadd.f32 %v1590_v10, %v731_v15  ;;  %v1108_v43 = vrot.slane %v1107_v29, 2  ;;  %v1099_v48 = vadd.f32 %v1098_v38, %v1097_v19 }
 0x10d   : > { %v1118_v16 = vrot.slane %v1117_v8, 4  ;;  %v1127_v17 = vadd.f32 %v1126_v9, %v1125_v7  ;;  %v903_v18 = vpop.f32.mrf.mxu0 }
 0x10e   : > { %v912_v20 = vadd.f32 %v903_v18, %v730_v11  ;;  %v992_v21 = vpop.f32.mrf.mxu1  ;;  %v1109_v55 = vadd.f32 %v1108_v43, %v1107_v29  ;;  %v1100_v61 = vrot.slane %v1099_v48, 1 }
 0x10f   : > { %v1119_v22 = vadd.f32 %v1118_v16, %v1117_v8  ;;  %v1128_v23 = vrot.slane %v1127_v17, 4  ;;  %v1003_v25 = vadd.f32 %v992_v21, %v823_v12  ;;  %v1595_v26 = vpop.f32.mrf.mxu0 }
 0x110   : > { %v1001_v27 = vadd.f32 %v990_v13, %v912_v20  ;;  %v996_v28 = vpop.f32.mrf.mxu1  ;;  %v1110_v3 = vrot.slane %v1109_v55, 1  ;;  %v1101_v9 = vadd.f32 %v1100_v61, %v1099_v48 }
 0x111   : > { %v1129_v30 = vadd.f32 %v1128_v23, %v1127_v17  ;;  %v1002_v31 = vadd.f32 %v996_v28, %v913_v24  ;;  %v1080_v32 = vpop.f32.mrf.mxu0  ;;  %v1120_v33 = vrot.slane %v1119_v22, 2  ;;  %v1179_v24 = vld [vmem:[#allocation3] sm:$0x1]  ;;  %v1182_v28 = vld [vmem:[#allocation3 + $0x1] sm:$0x1] }
 0x112   : > { %1530 = vst [vmem:[%s2015_s27 + $0x20] sm:$0xff] %v1001_v27  ;;  %v1147_v35 = vmul.f32 %v1001_v27, %v1001_v27  ;;  %v1089_v36 = vadd.f32 %v1080_v32, %v1003_v25  ;;  %v998_v37 = vpop.f32.mrf.mxu1  ;;  %v1111_v15 = vadd.f32 %v1110_v3, %v1109_v55 }
 0x113   : > { %1531 = vst [vmem:[%s2015_s27 + $0x28] sm:$0xff] %v1002_v31  ;;  %v1139_v39 = vadd.f32 %v1002_v31, %v1001_v27  ;;  %v1148_v40 = vmul.f32 %v1002_v31, %v1002_v31  ;;  %v1130_v41 = vrot.slane %v1129_v30, 2  ;;  %v1004_v42 = vadd.f32 %v998_v37, %v824_v34 }
 0x114   : > { %1533 = vst [vmem:[%s2015_s27 + $0x30] sm:$0xff] %v1089_v36  ;;  %v1121_v46 = vadd.f32 %v1120_v33, %v1119_v22  ;;  %v1169_v52 = vmul.f32 %v1089_v36, %v1089_v36 }
 0x115   : > { %v1140_v44 = vrot.slane %v1139_v39, 4  ;;  %v1149_v45 = vadd.f32 %v1148_v40, %v1147_v35  ;;  %v1090_v47 = vadd.f32 %v1595_v26, %v1004_v42  ;;  %v1131_v51 = vadd.f32 %v1130_v41, %v1129_v30 }
 0x116   : > { %v1122_v58 = vrot.slane %v1121_v46, 1 }
 0x117   : > { %v1141_v49 = vadd.f32 %v1140_v44, %v1139_v39  ;;  %v1150_v50 = vrot.slane %v1149_v45, 4  ;;  %1534 = vst [vmem:[%s2015_s27 + $0x38] sm:$0xff] %v1090_v47  ;;  %v1161_v53 = vadd.f32 %v1090_v47, %v1089_v36  ;;  %v1170_v54 = vmul.f32 %v1090_v47, %v1090_v47 }
 0x118   : > { %v1132_v0 = vrot.slane %v1131_v51, 1  ;;  %v1123_v6 = vadd.f32 %v1122_v58, %v1121_v46 }
 0x119   : > { %v1142_v56 = vrot.slane %v1141_v49, 2  ;;  %v1151_v57 = vadd.f32 %v1150_v50, %v1149_v45  ;;  %v1162_v59 = vrot.slane %v1161_v53, 4  ;;  %v1171_v60 = vadd.f32 %v1170_v54, %v1169_v52 }
 0x11a   : > { %v1133_v11 = vadd.f32 %v1132_v0, %v1131_v51  ;;  %v1124_v16 = vadd.f32 %v1123_v6, %v1101_v9 }
 0x11b   : > { %v1143_v62 = vadd.f32 %v1142_v56, %v1141_v49  ;;  %v1152_v63 = vrot.slane %v1151_v57, 2  ;;  %v1163_v1 = vadd.f32 %v1162_v59, %v1161_v53  ;;  %v1172_v2 = vrot.slane %v1171_v60, 4 }
 0x11c   : > { %v1134_v20 = vadd.f32 %v1133_v11, %v1111_v15 }
 0x11d   : > { %v1144_v4 = vrot.slane %v1143_v62, 1  ;;  %v1153_v5 = vadd.f32 %v1152_v63, %v1151_v57  ;;  %v1164_v7 = vrot.slane %v1163_v1, 2  ;;  %v1173_v8 = vadd.f32 %v1172_v2, %v1171_v60 }
 0x11f   : > { %v1154_v10 = vrot.slane %v1153_v5, 1  ;;  %v1145_v12 = vadd.f32 %v1144_v4, %v1143_v62  ;;  %v1165_v13 = vadd.f32 %v1164_v7, %v1163_v1  ;;  %v1174_v14 = vrot.slane %v1173_v8, 2 }
 0x121   : > { %v1155_v17 = vadd.f32 %v1154_v10, %v1153_v5  ;;  %v1166_v18 = vrot.slane %v1165_v13, 1  ;;  %v1175_v19 = vadd.f32 %v1174_v14, %v1173_v8  ;;  %v1146_v21 = vadd.f32 %v1145_v12, %v1124_v16 }
 0x123   : > { %v1167_v22 = vadd.f32 %v1166_v18, %v1165_v13  ;;  %v1176_v23 = vrot.slane %v1175_v19, 1  ;;  %v1156_v25 = vadd.f32 %v1155_v17, %v1134_v20 }
 0x125   : > { %v1168_v26 = vadd.f32 %v1167_v22, %v1146_v21  ;;  %v1177_v27 = vadd.f32 %v1176_v23, %v1175_v19 }
 0x127   : > { %v1178_v29 = vadd.f32 %v1177_v27, %v1156_v25  ;;  %v1180_v30 = vadd.f32 %v1179_v24, %v1168_v26 }
 0x129   : > { %1181 = vst [vmem:[#allocation3] sm:$0x1] %v1180_v30  ;;  %v1183_v31 = vadd.f32 %v1182_v28, %v1178_v29 }
 0x12b   : > { %1184 = vst [vmem:[#allocation3 + $0x1] sm:$0x1] %v1183_v31 }
 0x12c PF: > { %p1535_p2 = scmp.ne.s32.totalorder %s1769_s16, 1 }
 0x12d   : > { %p1536_p3 = scmp.ne.s32.totalorder (!%p1535_p2), %s1765_s15, 0 }
 0x12e   : > { %1188 = sbr.rel (%p1535_p2) target bundleno = 570 (0x23a), region = 44 }
 0x133   : > { %1192 = sbr.rel (%p1536_p3) target bundleno = 552 (0x228), region = 48 }
 0x138   : > { %v1193_v32 = vld [vmem:[#allocation3] sm:$0x1]  ;;  %vm1202_vm1 = vcmask 1040384   ;;  %v1194_v33 = vld [vmem:[#allocation3 + $0x1] sm:$0x1] }
 0x139   : > { %v1203_v34 = vsel %vm1202_vm1, %v1193_v32, 0.0  ;;  %v1195_v35 = vmul.f32 0.00390625, %v1193_v32  ;;  %v1214_v37 = vsel %vm1202_vm1, %v1194_v33, 0.0  ;;  %v1232_v43 = vld [vmem:[%s2104_s2] sm:$0x1] }
 0x13a   : > { %1204 = vadd.xlane.f32.xlu0 %v1203_v34  ;;  %v1236_v4 = vsub.f32 1.0, %v1232_v43  ;;  %v1233_v7 = vld [vmem:[%s2104_s2 + $0x1] sm:$0x1]  ;;  %v1234_v12 = vld [vmem:[%s2104_s2 + $0x2] sm:$0x1] }
 0x13b   : > { %v1196_v36 = vmul.f32 %v1195_v35, %v1193_v32 }
 0x13d   : > { %v1197_v38 = vsub.f32 %v1194_v33, %v1196_v36 }
 0x13e   : > { %1215 = vadd.xlane.f32.xlu0 %v1214_v37 }
 0x13f   : > { %v1198_v39 = vmul.f32 0.003921569, %v1197_v38 }
 0x141   : > { %v1199_v40 = vmax.f32 %v1198_v39, 0.0 }
 0x143   : > { %v1200_v41 = vadd.f32 1.1e-05, %v1199_v40 }
 0x145   : > { %1703 = vrsqrt.f32 %v1200_v41 }
 0x152   : > { %v1704_v42 = vpop.eup %1703 }
 0x153   : > { %v1235_v44 = vmul.f32 %v1704_v42, %v1232_v43 }
 0x155   : > { %v1241_v45 = vmul.f32 %v1235_v44, %v1195_v35 }
 0x1c3   : > { %v1205_v46 = vpop.xlane.xlu0 %1204 }
 0x1c4   : > { %v1206_v47 = vrot.slane %v1205_v46, 4 }
 0x1c6   : > { %v1207_v48 = vadd.f32 %v1206_v47, %v1205_v46 }
 0x1c7   : > { %v1216_v49 = vpop.xlane.xlu0 %1215 }
 0x1c8   : > { %v1208_v50 = vrot.slane %v1207_v48, 2  ;;  %v1217_v51 = vrot.slane %v1216_v49, 4 }
 0x1ca   : > { %v1218_v52 = vadd.f32 %v1217_v51, %v1216_v49  ;;  %v1209_v53 = vadd.f32 %v1208_v50, %v1207_v48 }
 0x1cc   : > { %v1219_v54 = vrot.slane %v1218_v52, 2  ;;  %v1210_v55 = vrot.slane %v1209_v53, 1 }
 0x1ce   : > { %v1220_v56 = vadd.f32 %v1219_v54, %v1218_v52  ;;  %v1211_v57 = vadd.f32 %v1210_v55, %v1209_v53 }
 0x1d0   : > { %1597 = vpush %v1211_v57  ;;  %v1221_v58 = vrot.slane %v1220_v56, 1 }
 0x1d2   : > { %v1222_v59 = vadd.f32 %v1221_v58, %v1220_v56 }
 0x1d4   : > { %1599 = vpush %v1222_v59 }
 0x201   : > { %s1598_s10 = spop %1597 }
 0x202   : > { %v1213_v60 = vstv %s1598_s10 }
 0x203   : > { %v1225_v61 = vmul.f32 0.0009765625, %v1213_v60 }
 0x205   : > { %v1226_v62 = vmul.f32 %v1225_v61, %v1213_v60  ;;  %s1600_s22 = spop %1599 }
 0x206   : > { %v1224_v63 = vstv %s1600_s22 }
 0x207   : > { %v1227_v0 = vsub.f32 %v1224_v63, %v1226_v62 }
 0x209   : > { %v1228_v1 = vmul.f32 0.0009775171, %v1227_v0 }
 0x20b   : > { %v1229_v2 = vmax.f32 %v1228_v1, 0.0 }
 0x20d   : > { %v1230_v3 = vadd.f32 1.1e-05, %v1229_v2 }
 0x20f   : > { %1705 = vrsqrt.f32 %v1230_v3 }
 0x21c   : > { %v1706_v5 = vpop.eup %1705 }
 0x21d   : > { %v1237_v6 = vmul.f32 %v1706_v5, %v1236_v4 }
 0x21f   : > { %v1238_v8 = vadd.f32 %v1237_v6, %v1235_v44  ;;  %v1242_v9 = vmul.f32 %v1237_v6, %v1225_v61 }
 0x221   : > { %v1239_v10 = vmul.f32 %v1238_v8, %v1233_v7  ;;  %v1243_v11 = vadd.f32 %v1242_v9, %v1241_v45 }
 0x223   : > { %1240 = vst [vmem:[#allocation4] sm:$0x1] %v1239_v10  ;;  %v1244_v13 = vmul.f32 %v1243_v11, %v1233_v7 }
 0x225   : > { %v1245_v14 = vsub.f32 %v1234_v12, %v1244_v13 }
 0x227   : > { %1246 = vst [vmem:[#allocation4 + $0x1] sm:$0x1] %v1245_v14 }
 0x228 PF: > { %s1537_s9 = sshll.u32 %s1765_s15, 6 }
 0x229   : > { %s1250_s29 = scalar_lea.vmem [#allocation2], %s1537_s9 }
 0x22a   : > { %v1538_v15 = vld [vmem:[#allocation4] ss:$0 sm:$0xff]  ;;  %v1252_v18 = vld [vmem:[%s1250_s29 + $0x8] sm:$0xff]  ;;  %v1541_v19 = vld [vmem:[%s1250_s29 + $0x10] sm:$0xff] }
 0x22b   : > { %v1251_v17 = vld [vmem:[%s1250_s29] sm:$0xff]  ;;  %v1258_v21 = vmul.f32 %v1538_v15, %v1252_v18  ;;  %v1277_v22 = vmul.f32 %v1541_v19, %v1538_v15  ;;  %v1542_v23 = vld [vmem:[%s1250_s29 + $0x18] sm:$0xff]  ;;  %v1547_v25 = vld [vmem:[%s1250_s29 + $0x28] sm:$0xff] }
 0x22c   : > { %v1257_v20 = vmul.f32 %v1538_v15, %v1251_v17  ;;  %v1546_v24 = vld [vmem:[%s1250_s29 + $0x20] sm:$0xff]  ;;  %v1278_v26 = vmul.f32 %v1542_v23, %v1538_v15  ;;  %v1295_v28 = vmul.f32 %v1547_v25, %v1538_v15  ;;  %v1551_v29 = vld [vmem:[%s1250_s29 + $0x30] sm:$0xff]  ;;  %v1552_v30 = vld [vmem:[%s1250_s29 + $0x38] sm:$0xff] }
 0x22d   : > { %v1294_v27 = vmul.f32 %v1546_v24, %v1538_v15  ;;  %v1311_v34 = vmul.f32 %v1551_v29, %v1538_v15  ;;  %v1312_v38 = vmul.f32 %v1552_v30, %v1538_v15 }
 0x22e   : > { %v1539_v16 = vld [vmem:[#allocation4 + $0x1] ss:$0 sm:$0xff] }
 0x22f   : > { %v1263_v31 = vadd.f32 %v1539_v16, %v1257_v20  ;;  %v1264_v32 = vadd.f32 %v1539_v16, %v1258_v21  ;;  %v1279_v33 = vadd.f32 %v1539_v16, %v1277_v22  ;;  %v1280_v35 = vadd.f32 %v1539_v16, %v1278_v26 }
 0x230   : > { %v1296_v36 = vadd.f32 %v1539_v16, %v1294_v27  ;;  %v1297_v37 = vadd.f32 %v1539_v16, %v1295_v28  ;;  %v1313_v50 = vadd.f32 %v1539_v16, %v1311_v34  ;;  %v1314_v51 = vadd.f32 %v1539_v16, %v1312_v38 }
 0x231   : > { %vm1265_vm2 = vcmp.ge.f32.partialorder %v1263_v31, 0.0  ;;  %v1267_v39 = vmul.f32 0.2, %v1263_v31  ;;  %vm1266_vm3 = vcmp.ge.f32.partialorder %v1264_v32, 0.0  ;;  %v1268_v40 = vmul.f32 0.2, %v1264_v32 }
 0x232   : > { %vm1281_vm4 = vcmp.ge.f32.partialorder %v1279_v33, 0.0  ;;  %v1283_v41 = vmul.f32 0.2, %v1279_v33  ;;  %vm1282_vm5 = vcmp.ge.f32.partialorder %v1280_v35, 0.0  ;;  %v1284_v42 = vmul.f32 0.2, %v1280_v35 }
 0x233   : > { %v1269_v43 = vsel %vm1265_vm2, %v1263_v31, %v1267_v39  ;;  %v1270_v44 = vsel %vm1266_vm3, %v1264_v32, %v1268_v40  ;;  %vm1298_vm6 = vcmp.ge.f32.partialorder %v1296_v36, 0.0  ;;  %v1300_v45 = vmul.f32 0.2, %v1296_v36 }
 0x234   : > { %1271 = vst [vmem:[%s1915_s4] sm:$0xff] %v1269_v43  ;;  %1272 = vst [vmem:[%s1915_s4 + $0x8] sm:$0xff] %v1270_v44  ;;  %v1285_v46 = vsel %vm1281_vm4, %v1279_v33, %v1283_v41  ;;  %v1286_v47 = vsel %vm1282_vm5, %v1280_v35, %v1284_v42  ;;  %vm1299_vm7 = vcmp.ge.f32.partialorder %v1297_v37, 0.0  ;;  %v1301_v48 = vmul.f32 0.2, %v1297_v37 }
 0x235   : > { %1543 = vst [vmem:[%s1915_s4 + $0x10] sm:$0xff] %v1285_v46  ;;  %1544 = vst [vmem:[%s1915_s4 + $0x18] sm:$0xff] %v1286_v47  ;;  %v1302_v49 = vsel %vm1298_vm6, %v1296_v36, %v1300_v45  ;;  %vm1315_vm8 = vcmp.ge.f32.partialorder %v1313_v50, 0.0  ;;  %v1317_v53 = vmul.f32 0.2, %v1313_v50  ;;  %vm1316_vm9 = vcmp.ge.f32.partialorder %v1314_v51, 0.0 }
 0x236   : > { %1548 = vst [vmem:[%s1915_s4 + $0x20] sm:$0xff] %v1302_v49  ;;  %v1303_v52 = vsel %vm1299_vm7, %v1297_v37, %v1301_v48  ;;  %v1318_v54 = vmul.f32 0.2, %v1314_v51 }
 0x237   : > { %1549 = vst [vmem:[%s1915_s4 + $0x28] sm:$0xff] %v1303_v52  ;;  %v1319_v55 = vsel %vm1315_vm8, %v1313_v50, %v1317_v53 }
 0x238   : > { %v1320_v56 = vsel %vm1316_vm9, %v1314_v51, %v1318_v54  ;;  %1553 = vst [vmem:[%s1915_s4 + $0x30] sm:$0xff] %v1319_v55 }
 0x239   : > { %1554 = vst [vmem:[%s1915_s4 + $0x38] sm:$0xff] %v1320_v56 }
 0x23a PF: > { %s2113_s27 = sand.u32 1, %s1757_s13  }
 0x23b   : > { %s1325_s7 = scalar_lea.sflag [#allocation6], %s2113_s27 }
 0x23c   : > { %s1332_s11 = smul.u32 %s1765_s15, %s1769_s16  ;;  %s1557_s10 = sshll.u32 %s1773_s17, 5 }
 0x23d   : > { %s1351_s22 = sshll.u32 %s1915_s4, 4  ;;  %s1793_s6 = smov 256   ;;  %s1352_s22 = int_to_ptr.vmem [resolvable:$true] %s1351_s22 }
 0x23e   : > { %s1556_s23 = sshll.u32 %s1332_s11, 1  ;;  %1601 = sst [smem:[#allocation8]] (%p1884_p5), %s1793_s6 }
 0x23f   : > { %s1338_s5 = sadd.s32 %s1557_s10, %s1556_s23  ;;  %s1794_s1 = smov 1024  }
 0x240   : > { %s1558_s0 = sshll.u32 %s1338_s5, 7  ;;  %1602 = sst [smem:[#allocation8 + $0x1]] (%p1884_p5), %s1794_s1 }
 0x241   : > { %s1340_s27 = scalar_lea.hbm %s2105_s3, %s1558_s0  ;;  %s1795_s15 = smov 2  }
 0x242   : > { %1603 = sst [smem:[#allocation8 + $0x2]] (%p1884_p5), %s1795_s15  ;;  %s1796_s16 = smov 128  }
 0x243   : > { %1604 = sst [smem:[#allocation8 + $0x3]] (%p1884_p5), %s1796_s16  ;;  %s1797_s17 = smov 8  }
 0x244   : > { %1605 = sst [smem:[#allocation8 + $0x4]] (%p1884_p5), %s1796_s16  ;;  %s1798_s4 = smov 131072  }
 0x245   : > { %1606 = sst [smem:[#allocation8 + $0x5]] (%p1884_p5), %s1797_s17  ;;  %s1799_s11 = smov 0  }
 0x246   : > { %1607 = dma.general (%p1884_p5), %s1352_s22, 1024, %s1340_s27, %s1325_s7, %s1798_s4, [#allocation8], %s1799_s11, 0  }
 0x247 PF: > { %p1613_p4 = scmp.ge.s32.totalorder %s1789_s21, 2  ;;  %s1379_s1 = sand.u32 1, %s1753_s12  }
 0x248   : > { %s1380_s10 = scalar_lea.sflag [#allocation6], %s1379_s1 }
 0x249   : > { %p1610_p6 = pnand %p1613_p4, %p1893_p7 }
 0x24b   : > { %p1611_p8 = pneg %p1610_p6 }
 0x24d   : > { %1748 = dma.done.wait (%p1611_p8), %s1380_s10, 1024  }
 0x24e   : > { %1750 = vsyncadd (%p1611_p8), %s1380_s10, 4294966272  ;;  %s16_s21 = sadd.s32 1, %s1789_s21   ;;  %s2114_s12 = smov %s1757_s13 }
 0x24f   : > { %p13_p9 = scmp.ge.s32.totalorder %s16_s21, 18   ;;  %s2115_s13 = smov %s1761_s14 }
 0x250   : > { %s2116_s14 = smov %s1905_s8  ;;  %s2117_s15 = smov %s1777_s18 }
 0x251   : > { %s2118_s16 = smov %s1781_s19  ;;  %s2119_s17 = smov %s1785_s20 }
 0x252   : > { %s2120_s18 = smov %s2124_s24  ;;  %s2121_s19 = smov %s2128_s25 }
 0x253   : > { %s2122_s20 = smov %s2132_s26  ;;  %15 = sbr.rel (!%p13_p9) target bundleno = 9 (0x9), region = 102 }
 0x258   :  { %1385 = vsyncpa [#allocation6], 1 }
 0x259   :  { %1387 = vsyncpa [#allocation6 + $0x1], 1 }

</bundles_post_ra>
